<compile_context>
chip_gen: v7x
topology: tpu7x:2x2x1
jax: 0.10.0
libtpu: 0.0.40
codegen_flags: <defaults>
</compile_context>

<pallas_src>
import functools

import jax
import jax.numpy as jnp
from jax.experimental import pallas as pl
from jax.experimental.pallas import tpu as pltpu

BN_EPS = 1e-5
_LANE = 128
_VMEM_LIMIT_BYTES = 48 * 1024 * 1024  # ample headroom on v5e/v6e (128 MiB) and v7x (64 MiB)


def _round_up(x, m):
    return ((x + m - 1) // m) * m


def _pick_tile_h(H, W, cpad, budget_bytes=4 * 1024 * 1024):
    """Largest divisor of H whose im2col buffer stays inside a VMEM budget."""
    per_row = W * 9 * cpad * 4  # f32 bytes of im2col per output row
    max_rows = max(1, budget_bytes // per_row)
    best = 1
    for cand in range(1, H + 1):
        if H % cand == 0 and cand <= max_rows:
            best = cand
    return best


# --------------------------------------------------------------------------
# Kernel 1/2: (optional folded BN+ReLU on input) -> 3x3 conv -> raw output
#             + per-channel sum / sum-of-squares accumulation.
# --------------------------------------------------------------------------
def _conv_stage_kernel(x_top_ref, x_cur_ref, x_bot_ref, w_ref, scale_ref, shift_ref,
                       y_ref, stats_ref, *, fuse_input, th, wd, cin, cout, mxu_dtype):
    i = pl.program_id(1)
    n_tiles = pl.num_programs(1)
    f32 = jnp.float32

    top = x_top_ref[0].astype(f32)   # (1,  W, Cin)  halo row above the tile
    cur = x_cur_ref[0].astype(f32)   # (TH, W, Cin)  current row tile
    bot = x_bot_ref[0].astype(f32)   # (1,  W, Cin)  halo row below the tile

    if fuse_input:
        # Fold the *previous* stage's BatchNorm affine + ReLU into the load,
        # so the normalized intermediate never touches HBM.
        s = scale_ref[...].reshape(1, 1, cin).astype(f32)
        b = shift_ref[...].reshape(1, 1, cin).astype(f32)
        top = jnp.maximum(top * s + b, 0.0)
        cur = jnp.maximum(cur * s + b, 0.0)
        bot = jnp.maximum(bot * s + b, 0.0)

    # Conv padding=1: halo rows at the image top/bottom boundary are zeros.
    top = jnp.where(i == 0, 0.0, top)
    bot = jnp.where(i == n_tiles - 1, 0.0, bot)

    rows = jnp.concatenate([top, cur, bot], axis=0)          # (TH+2, W,   Cin)
    zcol = jnp.zeros((th + 2, 1, cin), f32)
    xp = jnp.concatenate([zcol, rows, zcol], axis=1)          # (TH+2, W+2, Cin)

    # im2col: 9 shifted windows stacked on the channel axis -> ONE MXU matmul
    # with K = 9*Cin (instead of 9 thin K=Cin matmuls).
    taps = [xp[dy:dy + th, dx:dx + wd, :] for dy in range(3) for dx in range(3)]
    patches = jnp.concatenate(taps, axis=-1).reshape(th * wd, 9 * cin)

    acc = jnp.dot(patches.astype(mxu_dtype), w_ref[...].astype(mxu_dtype),
                  preferred_element_type=jnp.float32)          # (TH*W, Cout_pad)

    # Raw (pre-BN) conv output; Cout padded to a multiple of 128 -> lane-dense store.
    y_ref[...] = acc.reshape(1, th, wd, cout).astype(y_ref.dtype)

    # BatchNorm statistics: per-channel sum and sum-of-squares, accumulated
    # across the row-tile grid axis into a persistent per-image block.
    sums = jnp.sum(acc, axis=0, keepdims=True)                 # (1, Cout_pad)
    sqs = jnp.sum(acc * acc, axis=0, keepdims=True)            # (1, Cout_pad)
    upd = jnp.concatenate([sums, sqs, jnp.zeros((6, cout), f32)], axis=0)  # (8, Cout_pad)

    @pl.when(i == 0)
    def _init():
        stats_ref[...] = jnp.zeros_like(stats_ref)

    stats_ref[...] += upd[None, :, :]


def _conv_stage(x, wmat, th, cout_pad, *, fuse_input, scale=None, shift=None,
                mxu_dtype=jnp.float32):
    """One conv stage: raw conv output (channel-padded) + BN stats accumulator."""
    N, H, W, Cin = x.shape
    assert H % th == 0, (H, th)
    n_tiles = H // th

    if scale is None:  # stage 1: no folded input normalization
        scale = jnp.ones((1, Cin), jnp.float32)
        shift = jnp.zeros((1, Cin), jnp.float32)

    kernel = functools.partial(
        _conv_stage_kernel, fuse_input=fuse_input, th=th, wd=W, cin=Cin,
        cout=cout_pad, mxu_dtype=mxu_dtype)

    in_specs = [
        # 1-row top halo (clamped at the boundary; zeroed in-kernel)
        pl.BlockSpec((1, 1, W, Cin),
                     lambda n, i: (n, jnp.maximum(i * th - 1, 0), 0, 0)),
        # current row tile
        pl.BlockSpec((1, th, W, Cin), lambda n, i: (n, i, 0, 0)),
        # 1-row bottom halo (clamped at the boundary; zeroed in-kernel)
        pl.BlockSpec((1, 1, W, Cin),
                     lambda n, i: (n, jnp.minimum(i * th + th, H - 1), 0, 0)),
        # lane-dense 2D weight slab (9*Cin, Cout_pad); constant index -> stays VMEM-resident
        pl.BlockSpec((wmat.shape[0], cout_pad), lambda n, i: (0, 0)),
        pl.BlockSpec((1, Cin), lambda n, i: (0, 0)),   # scale  (folded BN of prev stage)
        pl.BlockSpec((1, Cin), lambda n, i: (0, 0)),   # shift
    ]
    out_shape = [
        jax.ShapeDtypeStruct((N, H, W, cout_pad), jnp.float32),  # raw conv output
        jax.ShapeDtypeStruct((N, 8, cout_pad), jnp.float32),     # [sum; sumsq; 0...]
    ]
    out_specs = [
        pl.BlockSpec((1, th, W, cout_pad), lambda n, i: (n, i, 0, 0)),
        pl.BlockSpec((1, 8, cout_pad), lambda n, i: (n, 0, 0)),   # persistent accumulator
    ]

    return pl.pallas_call(
        kernel,
        out_shape=out_shape,
        grid_spec=pl.GridSpec(grid=(N, n_tiles), in_specs=in_specs, out_specs=out_specs),
        compiler_params=pltpu.CompilerParams(
            dimension_semantics=("parallel", "arbitrary"),
            vmem_limit_bytes=_VMEM_LIMIT_BYTES),
    )(x, x, x, wmat, scale, shift)


# --------------------------------------------------------------------------
# Kernel 3: elementwise BN affine + ReLU (final stage-2 epilogue).
# --------------------------------------------------------------------------
def _bn_relu_kernel(y_ref, s_ref, b_ref, o_ref):
    s = s_ref[...].reshape(1, 1, 1, -1)
    b = b_ref[...].reshape(1, 1, 1, -1)
    o_ref[...] = jnp.maximum(y_ref[...] * s + b, 0.0).astype(o_ref.dtype)


def _bn_relu(y_raw, scale, shift, th):
    N, H, W, C = y_raw.shape
    n_tiles = H // th
    return pl.pallas_call(
        _bn_relu_kernel,
        out_shape=jax.ShapeDtypeStruct((N, H, W, C), jnp.float32),
        grid_spec=pl.GridSpec(
            grid=(N, n_tiles),
            in_specs=[
                pl.BlockSpec((1, th, W, C), lambda n, i: (n, i, 0, 0)),
                pl.BlockSpec((1, C), lambda n, i: (0, 0)),
                pl.BlockSpec((1, C), lambda n, i: (0, 0)),
            ],
            out_specs=pl.BlockSpec((1, th, W, C), lambda n, i: (n, i, 0, 0)),
        ),
        compiler_params=pltpu.CompilerParams(
            dimension_semantics=("parallel", "parallel"),
            vmem_limit_bytes=_VMEM_LIMIT_BYTES),
    )(y_raw, scale, shift)


# --------------------------------------------------------------------------
# Host-side glue (tiny O(C) work between kernels).
# --------------------------------------------------------------------------
def _finalize_stats(stats, gamma_pad, beta_pad, count, eps):
    """Turn per-image (sum, sumsq) into per-channel (scale, shift) for BN+affine."""
    total = jnp.sum(stats[:, 0, :], axis=0)
    totsq = jnp.sum(stats[:, 1, :], axis=0)
    mean = total / count
    var = jnp.maximum(totsq / count - mean * mean, 0.0)  # biased (training-mode) variance
    inv_std = jax.lax.rsqrt(var + eps)
    scale = gamma_pad * inv_std
    shift = beta_pad - mean * scale
    return scale.reshape(1, -1), shift.reshape(1, -1)


def _pack_weights(w_hwio, cin_pad, cout_pad):
    """HWIO (3,3,Ci,Co) -> lane-dense 2D slab (9*cin_pad, cout_pad), zero-padded."""
    kh, kw, ci, co = w_hwio.shape
    w = jnp.pad(w_hwio.astype(jnp.float32),
                ((0, 0), (0, 0), (0, cin_pad - ci), (0, cout_pad - co)))
    return w.reshape(kh * kw * cin_pad, cout_pad)


def _pad_vec(v, n):
    return jnp.pad(v.astype(jnp.float32), (0, n - v.shape[0]))


def double_conv(x_nchw, params, *, tile_h=None, mxu_dtype=jnp.float32):
    """DoubleConv forward (PyTorch NCHW in / NCHW out).

    Set mxu_dtype=jnp.bfloat16 on v6e/v7x for full-rate MXU (f32 accumulation kept).
    """
    x = jnp.transpose(x_nchw, (0, 2, 3, 1))  # NCHW -> NHWC (channels on the lane axis)
    N, H, W, Cin = x.shape

    w1, g1, b1 = params["w1"], params["g1"], params["b1"]
    w2, g2, b2 = params["w2"], params["g2"], params["b2"]
    Cmid, Cout = w1.shape[-1], w2.shape[-1]
    Cmid_p = _round_up(Cmid, _LANE)
    Cout_p = _round_up(Cout, _LANE)

    # Lane-dense 2D weight slabs.  Conv1 keeps the natural Cin (block = full dim);
    # conv2's input channels are padded to match the lane-dense intermediate.
    w1m = _pack_weights(w1, Cin, Cmid_p)      # (9*Cin,    Cmid_p)
    w2m = _pack_weights(w2, Cmid_p, Cout_p)   # (9*Cmid_p, Cout_p)
    g1p, b1p = _pad_vec(g1, Cmid_p), _pad_vec(b1, Cmid_p)
    g2p, b2p = _pad_vec(g2, Cout_p), _pad_vec(b2, Cout_p)

    th = tile_h if tile_h is not None else _pick_tile_h(H, W, max(Cmid_p, Cout_p))
    assert H % th == 0, (H, th)
    count = float(N * H * W)

    # Stage 1: conv1 + BN1 stats (raw, channel-padded output stays in HBM once).
    y1_raw, stats1 = _conv_stage(x, w1m, th, Cmid_p, fuse_input=False,
                                 mxu_dtype=mxu_dtype)
    s1, sh1 = _finalize_stats(stats1, g1p, b1p, count, BN_EPS)

    # Stage 2: BN1+ReLU folded into the input load, conv2 + BN2 stats.
    y2_raw, stats2 = _conv_stage(y1_raw, w2m, th, Cout_p, fuse_input=True,
                                 scale=s1, shift=sh1, mxu_dtype=mxu_dtype)
    s2, sh2 = _finalize_stats(stats2, g2p, b2p, count, BN_EPS)

    # Stage 3: BN2 + ReLU (cheap elementwise pass, lane-dense).
    out = _bn_relu(y2_raw, s2, sh2, th)

    out = out[..., :Cout]                       # drop channel padding
    return jnp.transpose(out, (0, 3, 1, 2))     # NHWC -> NCHW


def init_params(key, in_channels, out_channels, mid_channels=None):
    if not mid_channels:
        mid_channels = out_channels
    k1, k2, k3, k4 = jax.random.split(key, 4)
    # Conv weights stored HWIO (kh, kw, Cin, Cout); PyTorch OIHW -> HWIO.
    w1 = 0.1 * jax.random.normal(k1, (3, 3, in_channels, mid_channels), jnp.float32)
    w2 = 0.1 * jax.random.normal(k2, (3, 3, mid_channels, out_channels), jnp.float32)
    g1 = 1.0 + 0.1 * jax.random.normal(k3, (mid_channels,), jnp.float32)
    b1 = 0.1 * jnp.arange(mid_channels, dtype=jnp.float32)
    g2 = 1.0 + 0.1 * jax.random.normal(k4, (out_channels,), jnp.float32)
    b2 = -0.05 * jnp.arange(out_channels, dtype=jnp.float32)
    return {"w1": w1, "g1": g1, "b1": b1, "w2": w2, "g2": g2, "b2": b2}


# ----- pure-JAX reference (correctness sanity check) -----
def _ref_stage(x_nhwc, w_hwio, gamma, beta, eps=BN_EPS):
    y = jax.lax.conv_general_dilated(
        x_nhwc, w_hwio, window_strides=(1, 1), padding="SAME",
        dimension_numbers=("NHWC", "HWIO", "NHWC"))
    mean = jnp.mean(y, axis=(0, 1, 2), keepdims=True)
    var = jnp.mean(jnp.square(y - mean), axis=(0, 1, 2), keepdims=True)
    y = (y - mean) * jax.lax.rsqrt(var + eps) * gamma + beta
    return jnp.maximum(y, 0.0)


def _ref_double_conv(x_nchw, params):
    x = jnp.transpose(x_nchw, (0, 2, 3, 1))
    x = _ref_stage(x, params["w1"], params["g1"], params["b1"])
    x = _ref_stage(x, params["w2"], params["g2"], params["b2"])
    return jnp.transpose(x, (0, 3, 1, 2))


if __name__ == "__main__":
    key = jax.random.PRNGKey(0)
    k_x, k_p = jax.random.split(key)

    N, C_in, H, W = 2, 4, 16, 16
    C_out = 8

    x = jax.random.normal(k_x, (N, C_in, H, W), jnp.float32)  # PyTorch NCHW
    params = init_params(k_p, C_in, C_out)

    # tile_h=8 -> two row tiles per image, exercising the inter-tile halo path
    # and the cross-tile BN-stat accumulation.
    out = double_conv(x, params, tile_h=8)
    out = jax.block_until_ready(out)
    assert out.shape == (N, C_out, H, W), out.shape

    ref = jax.block_until_ready(_ref_double_conv(x, params))
    err = float(jnp.max(jnp.abs(out - ref)))
    assert err < 5e-3, f"mismatch vs reference: max abs err = {err}"

    print("KERNEL_OK")
</pallas_src>

<mosaic_0001>
module attributes {stable_mosaic.version = 11 : i64} {
  func.func @_conv_stage_kernel(%arg0: i32, %arg1: i32, %arg2: memref<1x1x16x4xf32, #tpu.memory_space<vmem>>, %arg3: memref<1x8x16x4xf32, #tpu.memory_space<vmem>>, %arg4: memref<1x1x16x4xf32, #tpu.memory_space<vmem>>, %arg5: memref<36x128xf32, #tpu.memory_space<vmem>>, %arg6: memref<1x4xf32, #tpu.memory_space<vmem>>, %arg7: memref<1x4xf32, #tpu.memory_space<vmem>>, %arg8: memref<1x8x16x128xf32, #tpu.memory_space<vmem>>, %arg9: memref<1x8x128xf32, #tpu.memory_space<vmem>>) attributes {dimension_semantics = [#tpu.dimension_semantics<parallel>, #tpu.dimension_semantics<arbitrary>], iteration_bounds = array<i64: 2, 2>, scalar_prefetch = 0 : i64, scratch_operands = 0 : i64, tpu.core_type = #tpu.core_type<tc>, window_params = [{transform_indices = @transform_0, window_bounds = array<i64: 1, 1, 16, 4>}, {transform_indices = @transform_1, window_bounds = array<i64: 1, 8, 16, 4>}, {transform_indices = @transform_2, window_bounds = array<i64: 1, 1, 16, 4>}, {pipeline_mode = #tpu.pipeline_mode<synchronous>, transform_indices = @transform_3, window_bounds = array<i64: 36, 128>}, {pipeline_mode = #tpu.pipeline_mode<synchronous>, transform_indices = @transform_4, window_bounds = array<i64: 1, 4>}, {pipeline_mode = #tpu.pipeline_mode<synchronous>, transform_indices = @transform_5, window_bounds = array<i64: 1, 4>}, {transform_indices = @transform_6, window_bounds = array<i64: 1, 8, 16, 128>}, {transform_indices = @transform_7, window_bounds = array<i64: 1, 8, 128>}]} {
    %c0 = arith.constant 0 : index
    %c0_0 = arith.constant 0 : index
    %c0_1 = arith.constant 0 : index
    %c0_2 = arith.constant 0 : index
    %0 = vector.load %arg2[%c0, %c0_0, %c0_1, %c0_2] : memref<1x1x16x4xf32, #tpu.memory_space<vmem>>, vector<1x1x16x4xf32>
    %1 = vector.shape_cast %0 : vector<1x1x16x4xf32> to vector<1x16x4xf32>
    %c0_3 = arith.constant 0 : index
    %c0_4 = arith.constant 0 : index
    %c0_5 = arith.constant 0 : index
    %c0_6 = arith.constant 0 : index
    %2 = vector.load %arg3[%c0_3, %c0_4, %c0_5, %c0_6] : memref<1x8x16x4xf32, #tpu.memory_space<vmem>>, vector<1x8x16x4xf32>
    %3 = vector.shape_cast %2 : vector<1x8x16x4xf32> to vector<8x16x4xf32>
    %c0_7 = arith.constant 0 : index
    %c0_8 = arith.constant 0 : index
    %c0_9 = arith.constant 0 : index
    %c0_10 = arith.constant 0 : index
    %4 = vector.load %arg4[%c0_7, %c0_8, %c0_9, %c0_10] : memref<1x1x16x4xf32, #tpu.memory_space<vmem>>, vector<1x1x16x4xf32>
    %5 = vector.shape_cast %4 : vector<1x1x16x4xf32> to vector<1x16x4xf32>
    %c0_i32 = arith.constant 0 : i32
    %6 = arith.cmpi eq, %arg1, %c0_i32 : i32
    %cst = arith.constant 0.000000e+00 : f32
    %7 = vector.broadcast %cst : f32 to vector<1x16x4xf32>
    %8 = arith.select %6, %7, %1 : vector<1x16x4xf32>
    %c1_i32 = arith.constant 1 : i32
    %9 = arith.cmpi eq, %arg1, %c1_i32 : i32
    %cst_11 = arith.constant 0.000000e+00 : f32
    %10 = vector.broadcast %cst_11 : f32 to vector<1x16x4xf32>
    %11 = arith.select %9, %10, %5 : vector<1x16x4xf32>
    %12 = tpu.concatenate %8, %3, %11 in 0 : vector<1x16x4xf32>, vector<8x16x4xf32>, vector<1x16x4xf32> -> vector<10x16x4xf32>
    %cst_12 = arith.constant 0.000000e+00 : f32
    %13 = vector.broadcast %cst_12 : f32 to vector<10x1x4xf32>
    %14 = tpu.concatenate %13, %12, %13 in 1 : vector<10x1x4xf32>, vector<10x16x4xf32>, vector<10x1x4xf32> -> vector<10x18x4xf32>
    %15 = vector.extract_strided_slice %14 {offsets = [0, 0, 0], sizes = [8, 16, 4], strides = [1, 1, 1]} : vector<10x18x4xf32> to vector<8x16x4xf32>
    %16 = vector.extract_strided_slice %14 {offsets = [0, 1, 0], sizes = [8, 16, 4], strides = [1, 1, 1]} : vector<10x18x4xf32> to vector<8x16x4xf32>
    %17 = vector.extract_strided_slice %14 {offsets = [0, 2, 0], sizes = [8, 16, 4], strides = [1, 1, 1]} : vector<10x18x4xf32> to vector<8x16x4xf32>
    %18 = vector.extract_strided_slice %14 {offsets = [1, 0, 0], sizes = [8, 16, 4], strides = [1, 1, 1]} : vector<10x18x4xf32> to vector<8x16x4xf32>
    %19 = vector.extract_strided_slice %14 {offsets = [1, 1, 0], sizes = [8, 16, 4], strides = [1, 1, 1]} : vector<10x18x4xf32> to vector<8x16x4xf32>
    %20 = vector.extract_strided_slice %14 {offsets = [1, 2, 0], sizes = [8, 16, 4], strides = [1, 1, 1]} : vector<10x18x4xf32> to vector<8x16x4xf32>
    %21 = vector.extract_strided_slice %14 {offsets = [2, 0, 0], sizes = [8, 16, 4], strides = [1, 1, 1]} : vector<10x18x4xf32> to vector<8x16x4xf32>
    %22 = vector.extract_strided_slice %14 {offsets = [2, 1, 0], sizes = [8, 16, 4], strides = [1, 1, 1]} : vector<10x18x4xf32> to vector<8x16x4xf32>
    %23 = vector.extract_strided_slice %14 {offsets = [2, 2, 0], sizes = [8, 16, 4], strides = [1, 1, 1]} : vector<10x18x4xf32> to vector<8x16x4xf32>
    %24 = tpu.concatenate %15, %16, %17, %18, %19, %20, %21, %22, %23 in 2 : vector<8x16x4xf32>, vector<8x16x4xf32>, vector<8x16x4xf32>, vector<8x16x4xf32>, vector<8x16x4xf32>, vector<8x16x4xf32>, vector<8x16x4xf32>, vector<8x16x4xf32>, vector<8x16x4xf32> -> vector<8x16x36xf32>
    %25 = vector.shape_cast %24 : vector<8x16x36xf32> to vector<128x36xf32>
    %c0_13 = arith.constant 0 : index
    %c0_14 = arith.constant 0 : index
    %26 = vector.load %arg5[%c0_13, %c0_14] : memref<36x128xf32, #tpu.memory_space<vmem>>, vector<36x128xf32>
    %cst_15 = arith.constant dense<0.000000e+00> : vector<128x128xf32>
    %27 = tpu.matmul %25, %26, %cst_15 {dimension_numbers = #tpu.dot_dimension_numbers<[1], [0], [0], [1], [0, 0, 1, 1], [], []>} : vector<128x36xf32>, vector<36x128xf32>, vector<128x128xf32> -> vector<128x128xf32>
    %28 = vector.shape_cast %27 : vector<128x128xf32> to vector<1x8x16x128xf32>
    %c0_16 = arith.constant 0 : index
    %c0_17 = arith.constant 0 : index
    %c0_18 = arith.constant 0 : index
    %c0_19 = arith.constant 0 : index
    %29 = vector.load %arg8[%c0_16, %c0_17, %c0_18, %c0_19] : memref<1x8x16x128xf32, #tpu.memory_space<vmem>>, vector<1x8x16x128xf32>
    tpu.vector_store %arg8[%c0_16, %c0_17, %c0_18, %c0_19], %28 {strides = array<i32>} : memref<1x8x16x128xf32, #tpu.memory_space<vmem>>, vector<1x8x16x128xf32>,
    %cst_20 = arith.constant dense<0.000000e+00> : vector<128xf32>
    %30 = vector.multi_reduction <add>, %27, %cst_20 [0] : vector<128x128xf32> to vector<128xf32>
    %31 = vector.shape_cast %30 : vector<128xf32> to vector<1x128xf32>
    %32 = arith.mulf %27, %27 : vector<128x128xf32>
    %cst_21 = arith.constant dense<0.000000e+00> : vector<128xf32>
    %33 = vector.multi_reduction <add>, %32, %cst_21 [0] : vector<128x128xf32> to vector<128xf32>
    %34 = vector.shape_cast %33 : vector<128xf32> to vector<1x128xf32>
    %cst_22 = arith.constant 0.000000e+00 : f32
    %35 = vector.broadcast %cst_22 : f32 to vector<6x128xf32>
    %36 = tpu.concatenate %31, %34, %35 in 0 : vector<1x128xf32>, vector<1x128xf32>, vector<6x128xf32> -> vector<8x128xf32>
    %c0_i32_23 = arith.constant 0 : i32
    %37 = arith.cmpi eq, %arg1, %c0_i32_23 : i32
    %38 = arith.extui %37 : i1 to i32
    %c0_i32_24 = arith.constant 0 : i32
    %39 = arith.cmpi ne, %38, %c0_i32_24 : i32
    scf.if %39 {
      %cst_31 = arith.constant 0.000000e+00 : f32
      %44 = vector.broadcast %cst_31 : f32 to vector<1x8x128xf32>
      %c0_32 = arith.constant 0 : index
      %c0_33 = arith.constant 0 : index
      %c0_34 = arith.constant 0 : index
      %45 = vector.load %arg9[%c0_32, %c0_33, %c0_34] : memref<1x8x128xf32, #tpu.memory_space<vmem>>, vector<1x8x128xf32>
      tpu.vector_store %arg9[%c0_32, %c0_33, %c0_34], %44 {strides = array<i32>} : memref<1x8x128xf32, #tpu.memory_space<vmem>>, vector<1x8x128xf32>,
    } else {
    }
    %c0_25 = arith.constant 0 : index
    %c0_26 = arith.constant 0 : index
    %c0_27 = arith.constant 0 : index
    %40 = vector.load %arg9[%c0_25, %c0_26, %c0_27] : memref<1x8x128xf32, #tpu.memory_space<vmem>>, vector<1x8x128xf32>
    %41 = vector.shape_cast %36 : vector<8x128xf32> to vector<1x8x128xf32>
    %42 = arith.addf %40, %41 : vector<1x8x128xf32>
    %c0_28 = arith.constant 0 : index
    %c0_29 = arith.constant 0 : index
    %c0_30 = arith.constant 0 : index
    %43 = vector.load %arg9[%c0_28, %c0_29, %c0_30] : memref<1x8x128xf32, #tpu.memory_space<vmem>>, vector<1x8x128xf32>
    tpu.vector_store %arg9[%c0_28, %c0_29, %c0_30], %42 {strides = array<i32>} : memref<1x8x128xf32, #tpu.memory_space<vmem>>, vector<1x8x128xf32>,
    return
  }
  func.func @transform_0(%arg0: i32, %arg1: i32) -> (i32, i32, i32, i32) {
    %c8_i32 = arith.constant 8 : i32
    %0 = arith.muli %arg1, %c8_i32 : i32
    %c1_i32 = arith.constant 1 : i32
    %1 = arith.subi %0, %c1_i32 : i32
    %c0_i32 = arith.constant 0 : i32
    %2 = arith.maxsi %1, %c0_i32 : i32
    %c0_i32_0 = arith.constant 0 : i32
    %c0_i32_1 = arith.constant 0 : i32
    %c0_i32_2 = arith.constant 0 : i32
    return %arg0, %2, %c0_i32_0, %c0_i32_1 : i32, i32, i32, i32
  }
  func.func @transform_1(%arg0: i32, %arg1: i32) -> (i32, i32, i32, i32) {
    %c0_i32 = arith.constant 0 : i32
    %c0_i32_0 = arith.constant 0 : i32
    %c0_i32_1 = arith.constant 0 : i32
    return %arg0, %arg1, %c0_i32, %c0_i32_0 : i32, i32, i32, i32
  }
  func.func @transform_2(%arg0: i32, %arg1: i32) -> (i32, i32, i32, i32) {
    %c8_i32 = arith.constant 8 : i32
    %0 = arith.muli %arg1, %c8_i32 : i32
    %c8_i32_0 = arith.constant 8 : i32
    %1 = arith.addi %0, %c8_i32_0 : i32
    %c15_i32 = arith.constant 15 : i32
    %2 = arith.minsi %1, %c15_i32 : i32
    %c0_i32 = arith.constant 0 : i32
    %c0_i32_1 = arith.constant 0 : i32
    %c0_i32_2 = arith.constant 0 : i32
    return %arg0, %2, %c0_i32, %c0_i32_1 : i32, i32, i32, i32
  }
  func.func @transform_3(%arg0: i32, %arg1: i32) -> (i32, i32) {
    %c0_i32 = arith.constant 0 : i32
    %c0_i32_0 = arith.constant 0 : i32
    %c0_i32_1 = arith.constant 0 : i32
    return %c0_i32, %c0_i32_0 : i32, i32
  }
  func.func @transform_4(%arg0: i32, %arg1: i32) -> (i32, i32) {
    %c0_i32 = arith.constant 0 : i32
    %c0_i32_0 = arith.constant 0 : i32
    %c0_i32_1 = arith.constant 0 : i32
    return %c0_i32, %c0_i32_0 : i32, i32
  }
  func.func @transform_5(%arg0: i32, %arg1: i32) -> (i32, i32) {
    %c0_i32 = arith.constant 0 : i32
    %c0_i32_0 = arith.constant 0 : i32
    %c0_i32_1 = arith.constant 0 : i32
    return %c0_i32, %c0_i32_0 : i32, i32
  }
  func.func @transform_6(%arg0: i32, %arg1: i32) -> (i32, i32, i32, i32) {
    %c0_i32 = arith.constant 0 : i32
    %c0_i32_0 = arith.constant 0 : i32
    %c0_i32_1 = arith.constant 0 : i32
    return %arg0, %arg1, %c0_i32, %c0_i32_0 : i32, i32, i32, i32
  }
  func.func @transform_7(%arg0: i32, %arg1: i32) -> (i32, i32, i32) {
    %c0_i32 = arith.constant 0 : i32
    %c0_i32_0 = arith.constant 0 : i32
    %c0_i32_1 = arith.constant 0 : i32
    return %arg0, %c0_i32, %c0_i32_0 : i32, i32, i32
  }
}

</mosaic_0001>

<bundles_post_ra>
// kernel: tpu_custom_call.1
= control target key start
LH: loop header
LB: loop body
LE: loop exit
PB: predicated region body
PF: predicated region fallthrough
CT: control target
= control target key end

     0   :  { %s3023_s0 = inlined_call_operand.vmem [shape: f32[2,16,16,4], index: 0, kind: input, shape index: {}]   ;;  %s3024_s1 = inlined_call_operand.vmem [shape: f32[2,16,16,4], index: 1, kind: input, shape index: {}]   ;;  %s3025_s2 = inlined_call_operand.vmem [shape: f32[2,16,16,4], index: 2, kind: input, shape index: {}]   ;;  %s3026_s3 = inlined_call_operand.vmem [shape: f32[36,128], index: 3, kind: input, shape index: {}]   ;;  %s3027_s4 = inlined_call_operand.vmem [shape: f32[1,4], index: 4, kind: input, shape index: {}]   ;;  %s3028_s5 = inlined_call_operand.vmem [shape: f32[1,4], index: 5, kind: input, shape index: {}]   ;;  %s3029_s6 = inlined_call_operand.hbm [shape: f32[2,16,16,128], index: 6, kind: output, shape index: {0}]   ;;  %s3030_s7 = inlined_call_operand.hbm [shape: f32[2,8,128], index: 7, kind: output, shape index: {1}]  }
   0x1   :  { %3043 = sst [smem:[#allocation15_spill]] %s3023_s0 }
   0x2   :  { %3044 = sst [smem:[#allocation16_spill]] %s3024_s1 }
   0x3   :  { %13 = vsyncpa [#allocation3], 0 }
   0x4   :  { %15 = vsyncpa [#allocation3 + $0x1], 0 }
   0x5   :  { %16 = vsyncpa [#allocation5], 0 }
   0x6   :  { %18 = vsyncpa [#allocation5 + $0x1], 0  ;;  %s2159_s24 = smov 0   ;;  %s2161_s25 = smov 0  }
   0x7   :  { %s2163_s26 = smov 0   ;;  %s2165_s4 = smov 0  }
   0x8   :  { %s2167_s27 = smov 0   ;;  %s2169_s5 = smov 0  }
   0x9   :  { %s2171_s28 = smov 0   ;;  %s2173_s29 = smov 0  }
   0xa   :  { %s2175_s30 = smov 0   ;;  %s2177_s8 = smov 0  }
   0xb   :  { %s2179_s9 = smov 0  }
   0xc LB: > { %3045 = sst [smem:[#allocation8_spill]] %s2085_s5  ;;  %s1700_s10 = sadd.s32 4294967295, %s2105_s9   ;;  %s2105_s9 = sphi %s2179_s9, %s24_s9   ;;  %s2101_s8 = sphi %s2177_s8, %s3072_s8   ;;  %s2097_s30 = sphi %s2175_s30, %s3071_s30   ;;  %s2093_s29 = sphi %s2173_s29, %s3070_s29   ;;  %s2089_s28 = sphi %s2171_s28, %s3069_s28   ;;  %s2085_s5 = sphi %s2169_s5, %s3068_s5   ;;  %s2081_s27 = sphi %s2167_s27, %s3077_s27   ;;  %s2077_s4 = sphi %s2165_s4, %s3076_s4   ;;  %s2073_s26 = sphi %s2163_s26, %s3075_s26   ;;  %s2069_s25 = sphi %s2161_s25, %s3074_s25   ;;  %s2065_s24 = sphi %s2159_s24, %s3073_s24  }
   0xd   : > { %3046 = sst [smem:[#allocation9_spill]] %s2097_s30  ;;  %s1701_s11 = sadd.s32 4294967294, %s2105_s9  }
   0xe   : > { %3047 = sst [smem:[#allocation10_spill]] %s2101_s8  ;;  %s33_s12 = sadd.s32 1, %s2097_s30 }
   0xf   : > { %s36_s13 = sadd.s32 1, %s2101_s8  ;;  %p34_p0 = scmp.ge.s32.totalorder %s33_s12, 2 }
  0x10   : > { %s208_s14 = sadd.s32 1, %s2085_s5  ;;  %p218_p1 = scmp.ne.s32.totalorder %s2085_s5, %s2081_s27 }
  0x11   : > { %p2221_p2 = scmp.eq.s32.totalorder %s1700_s10, 3  ;;  %s3079_s12 = smov (%p34_p0, %s33_s12), 0 }
  0x12   : > { %3049 = sst [smem:[#allocation11_spill]] %s3079_s12  ;;  %s3081_s13 = smov (!%p34_p0, %s36_s13), %s2101_s8 }
  0x13   : > { %s204_s16 = ssub.s32 %s2097_s30, %s3079_s12  ;;  %p2232_p3 = por %p2221_p2, %p218_p1 }
  0x14   : > { %p38_p4 = scmp.ge.s32.totalorder %s3081_s13, 2  ;;  %p224_p5 = scmp.ne.s32.totalorder %s2081_s27, %s2077_s4 }
  0x15   : > { %p2238_p6 = scmp.eq.s32.totalorder %s1701_s11, 3  ;;  %s234_s19 = sadd.s32 1, %s2073_s26 }
  0x16   : > { %s3083_s13 = smov (%p38_p4, %s3081_s13), 0  ;;  %p244_p8 = scmp.ne.s32.totalorder %s2073_s26, %s2069_s25 }
  0x17   : > { %3052 = sst [smem:[#allocation12_spill]] %s3083_s13  ;;  %p2247_p7 = por %p2238_p6, %p224_p5 }
  0x18   : > { %s203_s21 = ssub.s32 %s2101_s8, %s3083_s13  ;;  %p250_p9 = scmp.ne.s32.totalorder %s2069_s25, %s2065_s24 }
  0x19   : > { %s205_s22 = sor.u32 %s204_s16, %s203_s21  ;;  %p232_p10 = scmp.eq.s32.totalorder %s203_s21, 0 }
  0x1a   : > { %p206_p11 = scmp.eq.s32.totalorder %s205_s22, 0  ;;  %p2259_p12 = por %p244_p8, %p2221_p2 }
  0x1b   : > { %s2264_s10 = scalar_select %p232_p10, %s2073_s26, %s234_s19  }
  0x1c   : > { %s2267_s11 = scalar_select %p206_p11, %s2085_s5, %s208_s14  }
  0x1d   : > { %3055 = sst [smem:[#allocation13_spill]] %s2264_s10  ;;  %p2271_p13 = por %p250_p9, %p2238_p6 }
  0x1e   : > { %3056 = sst [smem:[#allocation14_spill]] %s2267_s11  ;;  %p1710_p0 = scmp.ge.s32.totalorder %s2105_s9, 1 }
  0x1f   : > { %p332_p1 = scmp.lt.s32.totalorder %s2105_s9, 5 }
  0x21   : > { %p333_p4 = pnand %p1710_p0, %p332_p1 }
  0x22   : > { %s2278_s15 = sshll.u32 (!%p333_p4), %s2089_s28, 3  ;;  %p404_p2 = scmp.lt.s32.totalorder (!%p333_p4), %s2093_s29, 1  ;;  %vm498_vm0 = vcmask (!%p333_p4), 1040384   ;;  %vm593_vm1 = vcmask (!%p333_p4), 1046528   ;;  %vm682_vm2 = vcmask (!%p333_p4), 1045504   ;;  %v1219_v40 = vld [vmem:[%s3026_s3] sm:$0xff] (!%p333_p4) }
  0x23   : > { %336 = sbr.rel (%p333_p4) target bundleno = 707 (0x2c3), region = 44  ;;  %p420_p5 = scmp.lt.s32.totalorder (!%p333_p4), %s2278_s15, 15  ;;  %v1220_v41 = vld [vmem:[%s3026_s3 + $0x8] sm:$0xff] (!%p333_p4)  ;;  %v1221_v45 = vld [vmem:[%s3026_s3 + $0x10] sm:$0xff] (!%p333_p4)  ;;  %v1222_v46 = vld [vmem:[%s3026_s3 + $0x18] sm:$0xff] (!%p333_p4)  ;;  %vm1273_vm3 = vcmask (!%p333_p4), 1043456  }
  0x24   : > { %s3058_s1 = sld [smem:[#allocation16_spill]] (!%p333_p4)  ;;  %s1714_s11 = sadd.s32 (!%p333_p4), 4294967295, %s2278_s15  ;;  %v1819_v42 = vpack.c.bf16 (!%p333_p4), %v1220_v41, %v1219_v40  ;;  %v1823_v48 = vpack.c.bf16 (!%p333_p4), %v1222_v46, %v1221_v45  ;;  %v1223_v50 = vld [vmem:[%s3026_s3 + $0x20] sm:$0xf] (!%p333_p4)  ;;  %vm1083_vm4 = vcmask (!%p333_p4), 31744   ;;  %vm1100_vm5 = vcmask (!%p333_p4), 64512  }
  0x25   : > { %p402_p6 = scmp.gt.s32.totalorder (!%p333_p4), %s1714_s11, 0  ;;  %p1715_p8 = scmp.lt.s32.totalorder (!%p333_p4), %s1714_s11, 15  ;;  %vm1117_vm6 = vcmask (!%p333_p4), 97280   ;;  %vm1134_vm7 = vcmask (!%p333_p4), 130048   ;;  %vm1151_vm8 = vcmask (!%p333_p4), 162816   ;;  %vm1168_vm9 = vcmask (!%p333_p4), 195584  }
  0x26   : > { %p466_p9 = scmp.eq.s32.totalorder (!%p333_p4), %s2089_s28, 0  ;;  %s3035_s8 = smov (!%p333_p4), 12   ;;  %1820 = vmatprep.subr.bf16.mxu0 (!%p333_p4), %v1819_v42  ;;  %1827 = vmatprep.subr.bf16.mxu1 (!%p333_p4), %v1819_v42  ;;  %vm1185_vm10 = vcmask (!%p333_p4), 228352   ;;  %vm1202_vm11 = vcmask (!%p333_p4), 261120   ;;  %vm1224_vm12 = vcmask (!%p333_p4), 293888   ;;  %vm1497_vm13 = vcmask (!%p333_p4), 1041408  }
  0x27   : > { %s3059_s0 = sld [smem:[#allocation15_spill]] (!%p333_p4)  ;;  %s3038_s10 = smov (!%p333_p4), 20   ;;  %1822 = vmatpush3.bf16.msra.mxu0 (!%p333_p4), %v1819_v42  ;;  %1830 = vmatpush3.bf16.msra.mxu1 (!%p333_p4), %v1819_v42 }
  0x28   : > { %1824 = vmatprep.subr.bf16.mxu0 (!%p333_p4), %v1823_v48  ;;  %1828 = vmatprep.subr.bf16.mxu1 (!%p333_p4), %v1823_v48  ;;  %p472_p10 = scmp.eq.s32.totalorder (!%p333_p4), %s2089_s28, 1  ;;  %p1751_p0 = scmp.ne.s32.totalorder (!%p333_p4), %s2089_s28, 0 }
  0x2a   : > { %s405_s14 = scalar_select %p404_p2, %s2093_s29, 1 }
  0x2b   : > { %s421_s16 = scalar_select %p420_p5, %s2278_s15, 15  ;;  %1826 = vmatpush3.bf16.msra.mxu0 %v1823_v48  ;;  %1831 = vmatpush3.bf16.msra.mxu1 %v1823_v48 }
  0x2c   : > { %s2284_s18 = sshll.u32 %s405_s14, 5  ;;  %1793 = vmatprep.subr.msk.mxu0 %vm1273_vm3, %v1223_v50  ;;  %1829 = vmatprep.subr.msk.mxu1 %vm1273_vm3, %v1223_v50 }
  0x2d   : > { %s1724_s19 = sshll.u32 %s421_s16, 1 }
  0x2e   : > { %s424_s21 = sadd.s32 %s1724_s19, %s2284_s18  ;;  %s2108_s19 = smov 4  }
  0x2f   : > { %s1726_s22 = sshll.u32 %s424_s21, 3  ;;  %s2109_s21 = smov 16   ;;  %1794 = vmatpush3.msk.msra.mxu0 %vm1273_vm3, %v1223_v50  ;;  %1832 = vmatpush3.msk.msra.mxu1 %vm1273_vm3, %v1223_v50 }
  0x30   : > { %s2290_s30 = scalar_lea.vmem %s3058_s1, %s1726_s22 }
  0x31   : > { %v448_v0 = vld [vmem:[%s2290_s30] sm:$0xff]  ;;  %v449_v1 = vld [vmem:[%s2290_s30 + $0x8] sm:$0xff]  ;;  %s403_s14 = scalar_select %p402_p6, %s1714_s11, 0  ;;  %v450_v28 = vld [vmem:[%s2290_s30 + $0x10] sm:$0xff] }
  0x32   : > { %v502_v2 = vrot.slane %v448_v0, 7  ;;  %v503_v3 = vrot.slane %v449_v1, 7  ;;  %s1944_s5 = scalar_select %p466_p9, 0, 255  ;;  %v451_v31 = vld [vmem:[%s2290_s30 + $0x18] sm:$0xff]  ;;  %v505_v34 = vrot.slane %v450_v28, 7 }
  0x33   : > { %s3085_s14 = smov (!%p1715_p8, %s403_s14), 15  ;;  %v506_v36 = vrot.slane %v451_v31, 7  ;;  %v452_v58 = vld [vmem:[%s2290_s30 + $0x20] sm:$0xff]  ;;  %v453_v59 = vld [vmem:[%s2290_s30 + $0x28] sm:$0xff] }
  0x34   : > { %v2297_v4 = vsel %vm498_vm0, 0.0, %v502_v2  ;;  %v2300_v5 = vsel %vm498_vm0, %v502_v2, %v503_v3  ;;  %v568_v6 = vsel %vm498_vm0, %v503_v3, 0.0  ;;  %s1720_s13 = sshll.u32 %s3085_s14, 1  ;;  %s3041_s14 = smov 8   ;;  %v2349_v37 = vsel %vm498_vm0, 0.0, %v505_v34 }
  0x35   : > { %772 = vrot.lane.b32.xlu0 %v2297_v4, %s3035_s8  ;;  %774 = vrot.lane.b32.xlu1 %v2300_v5, %s3035_s8  ;;  %v599_v7 = vrot.slane %v2297_v4, 1  ;;  %v600_v8 = vrot.slane %v2300_v5, 1  ;;  %v688_v9 = vrot.slane %v2297_v4, 2  ;;  %v689_v10 = vrot.slane %v2300_v5, 2  ;;  %s410_s16 = sadd.s32 %s2284_s18, %s1720_s13  ;;  %s3062_s8 = smov 8  }
  0x36   : > { %v602_v11 = vrot.slane %v568_v6, 1  ;;  %s1722_s22 = sshll.u32 %s410_s16, 3  ;;  %v691_v35 = vrot.slane %v568_v6, 2  ;;  %v2353_v39 = vsel %vm498_vm0, %v505_v34, %v506_v36  ;;  %s2112_s16 = smov 24   ;;  %v604_v43 = vrot.slane %v2349_v37, 1 }
  0x37   : > { %v601_v12 = vsel %vm593_vm1, %v599_v7, %v600_v8  ;;  %v690_v13 = vsel %vm682_vm2, %v688_v9, %v689_v10  ;;  %s412_s1 = scalar_lea.vmem %s3059_s0, %s1722_s22  ;;  %s3040_s22 = sand.u32 1, %s2069_s25   ;;  %v605_v44 = vrot.slane %v2353_v39, 1  ;;  %v569_v49 = vsel %vm498_vm0, %v506_v36, 0.0 }
  0x38   : > { %v603_v14 = vsel %vm593_vm1, %v600_v8, %v602_v11  ;;  %v1945_v15 = vld [vmem:[%s412_s1] sm:%s1944_s5]  ;;  %v1948_v16 = vld [vmem:[%s412_s1 + $0x8] sm:%s1944_s5]  ;;  %v692_v38 = vsel %vm682_vm2, %v689_v10, %v691_v35  ;;  %s2369_s11 = sshll.u32 %s3040_s22, 3  ;;  %s3060_s1 = smov 12   ;;  %v693_v51 = vrot.slane %v2349_v37, 2  ;;  %v694_v52 = vrot.slane %v2353_v39, 2 }
  0x39   : > { %638 = vrot.lane.b32.xlu1 %v601_v12, %s2108_s19  ;;  %826 = vrot.lane.b32.xlu0 %v601_v12, %s2109_s21  ;;  %v499_v17 = vrot.slane %v1945_v15, 7  ;;  %v500_v18 = vrot.slane %v1948_v16, 7  ;;  %v606_v47 = vsel %vm593_vm1, %v604_v43, %v605_v44  ;;  %s2113_s22 = smov 28   ;;  %v607_v53 = vrot.slane %v569_v49, 1  ;;  %s429_s13 = sadd.s32 8, %s2278_s15 }
  0x3a   : > { %v695_v54 = vsel %vm682_vm2, %v693_v51, %v694_v52  ;;  %v696_v56 = vrot.slane %v569_v49, 2  ;;  %v508_v60 = vrot.slane %v452_v58, 7  ;;  %v509_v61 = vrot.slane %v453_v59, 7  ;;  %p2685_p11 = scmp.lt.s32.totalorder %s429_s13, 15 }
  0x3b   : > { %v2326_v19 = vsel %vm498_vm0, 0.0, %v499_v17  ;;  %v2331_v20 = vsel %vm498_vm0, %v499_v17, %v500_v18  ;;  %v567_v23 = vsel %vm498_vm0, %v500_v18, 0.0  ;;  %v608_v55 = vsel %vm593_vm1, %v605_v44, %v607_v53 }
  0x3c   : > { %v683_v21 = vrot.slane %v2326_v19, 2  ;;  %v594_v22 = vrot.slane %v2326_v19, 1  ;;  %v684_v24 = vrot.slane %v2331_v20, 2  ;;  %v595_v25 = vrot.slane %v2331_v20, 1  ;;  %s3087_s13 = smov (!%p2685_p11, %s429_s13), 15 }
  0x3d   : > { %879 = vrot.lane.b32.xlu1 %v690_v13, %s3038_s10  ;;  %828 = vrot.lane.b32.xlu0 %v603_v14, %s2109_s21  ;;  %v686_v26 = vrot.slane %v567_v23, 2  ;;  %v597_v27 = vrot.slane %v567_v23, 1  ;;  %v697_v57 = vsel %vm682_vm2, %v694_v52, %v696_v56  ;;  %v2407_v62 = vsel %vm498_vm0, 0.0, %v508_v60  ;;  %s3089_s13 = smov (!%p2685_p11, %s3087_s13), 15 }
  0x3e   : > { %v685_v29 = vsel %vm682_vm2, %v683_v21, %v684_v24  ;;  %v596_v30 = vsel %vm593_vm1, %v594_v22, %v595_v25  ;;  %v2410_v63 = vsel %vm498_vm0, %v508_v60, %v509_v61  ;;  %v609_v0 = vrot.slane %v2407_v62, 1 }
  0x3f   : > { %v687_v32 = vsel %vm682_vm2, %v684_v24, %v686_v26  ;;  %v598_v33 = vsel %vm593_vm1, %v595_v25, %v597_v27  ;;  %v610_v1 = vrot.slane %v2410_v63, 1  ;;  %v570_v3 = vsel %vm498_vm0, %v509_v61, 0.0 }
  0x40   : > { %v698_v6 = vrot.slane %v2407_v62, 2  ;;  %v699_v7 = vrot.slane %v2410_v63, 2  ;;  %v612_v8 = vrot.slane %v570_v3, 1  ;;  %v701_v11 = vrot.slane %v570_v3, 2 }
  0x41   : > { %727 = vrot.lane.b32.xlu1 %v690_v13, %s3041_s14  ;;  %640 = vrot.lane.b32.xlu0 %v603_v14, %s2108_s19  ;;  %v611_v2 = vsel %vm593_vm1, %v609_v0, %v610_v1  ;;  %v454_v13 = vld [vmem:[%s2290_s30 + $0x30] sm:$0xff]  ;;  %v455_v14 = vld [vmem:[%s2290_s30 + $0x38] sm:$0xff] }
  0x42   : > { %v700_v9 = vsel %vm682_vm2, %v698_v6, %v699_v7  ;;  %v613_v10 = vsel %vm593_vm1, %v610_v1, %v612_v8  ;;  %v702_v12 = vsel %vm682_vm2, %v699_v7, %v701_v11  ;;  %v511_v15 = vrot.slane %v454_v13, 7  ;;  %v458_v8 = vld [vmem:[%s2290_s30 + $0x50] sm:$0xff] }
  0x43   : > { %v512_v16 = vrot.slane %v455_v14, 7 }
  0x44   : > { %v2444_v17 = vsel %vm498_vm0, 0.0, %v511_v15 }
  0x45   : > { %723 = vrot.lane.b32.xlu1 %v685_v29, %s3041_s14  ;;  %634 = vrot.lane.b32.xlu0 %v596_v30, %s2108_s19  ;;  %v2447_v18 = vsel %vm498_vm0, %v511_v15, %v512_v16  ;;  %v614_v21 = vrot.slane %v2444_v17, 1  ;;  %v571_v24 = vsel %vm498_vm0, %v512_v16, 0.0  ;;  %v703_v25 = vrot.slane %v2444_v17, 2 }
  0x46   : > { %v615_v22 = vrot.slane %v2447_v18, 1  ;;  %v704_v26 = vrot.slane %v2447_v18, 2  ;;  %v617_v27 = vrot.slane %v571_v24, 1  ;;  %v706_v30 = vrot.slane %v571_v24, 2 }
  0x48   : > { %v616_v23 = vsel %vm593_vm1, %v614_v21, %v615_v22  ;;  %v705_v28 = vsel %vm682_vm2, %v703_v25, %v704_v26  ;;  %v618_v29 = vsel %vm593_vm1, %v615_v22, %v617_v27  ;;  %v707_v31 = vsel %vm682_vm2, %v704_v26, %v706_v30 }
  0x49   : > { %725 = vrot.lane.b32.xlu1 %v687_v32, %s3041_s14  ;;  %636 = vrot.lane.b32.xlu0 %v598_v33, %s2108_s19  ;;  %v456_v32 = vld [vmem:[%s2290_s30 + $0x40] sm:$0xff]  ;;  %v457_v33 = vld [vmem:[%s2290_s30 + $0x48] sm:$0xff] }
  0x4a   : > { %v514_v34 = vrot.slane %v456_v32, 7 }
  0x4c   : > { %v2484_v40 = vsel %vm498_vm0, 0.0, %v514_v34 }
  0x4d   : > { %928 = vrot.lane.b32.xlu1 %v2349_v37, %s2112_s16  ;;  %881 = vrot.lane.b32.xlu0 %v692_v38, %s3038_s10  ;;  %s2114_s10 = smov 32   ;;  %v619_v44 = vrot.slane %v2484_v40, 1  ;;  %v708_v52 = vrot.slane %v2484_v40, 2 }
  0x51   : > { %776 = vrot.lane.b32.xlu1 %v2349_v37, %s3060_s1  ;;  %729 = vrot.lane.b32.xlu0 %v692_v38, %s3041_s14  ;;  %s3061_s14 = smov 20   ;;  %v515_v38 = vrot.slane %v457_v33, 7 }
  0x53   : > { %v2489_v43 = vsel %vm498_vm0, %v514_v34, %v515_v38  ;;  %v572_v51 = vsel %vm498_vm0, %v515_v38, 0.0 }
  0x54   : > { %v620_v45 = vrot.slane %v2489_v43, 1  ;;  %v709_v53 = vrot.slane %v2489_v43, 2  ;;  %v711_v61 = vrot.slane %v572_v51, 2 }
  0x55   : > { %982 = vrot.lane.b32.xlu1 %v606_v47, %s2113_s22  ;;  %930 = vrot.lane.b32.xlu0 %v2353_v39, %s2112_s16 }
  0x56   : > { %v621_v48 = vsel %vm593_vm1, %v619_v44, %v620_v45  ;;  %v712_v3 = vsel %vm682_vm2, %v709_v53, %v711_v61 }
  0x59   : > { %830 = vrot.lane.b32.xlu1 %v606_v47, %s2109_s21  ;;  %778 = vrot.lane.b32.xlu0 %v2353_v39, %s3060_s1 }
  0x5d   : > { %1035 = vrot.lane.b32.xlu1 %v695_v54, %s2114_s10  ;;  %984 = vrot.lane.b32.xlu0 %v608_v55, %s2113_s22 }
  0x61   : > { %832 = vrot.lane.b32.xlu1 %v608_v55, %s2109_s21  ;;  %642 = vrot.lane.b32.xlu0 %v606_v47, %s2108_s19 }
  0x65   : > { %1037 = vrot.lane.b32.xlu1 %v697_v57, %s2114_s10  ;;  %883 = vrot.lane.b32.xlu0 %v695_v54, %s3061_s14 }
  0x69   : > { %731 = vrot.lane.b32.xlu1 %v695_v54, %s3062_s8  ;;  %644 = vrot.lane.b32.xlu0 %v608_v55, %s2108_s19  ;;  %v622_v54 = vrot.slane %v572_v51, 1 }
  0x6b   : > { %v623_v58 = vsel %vm593_vm1, %v620_v45, %v622_v54 }
  0x6d   : > { %932 = vrot.lane.b32.xlu1 %v2407_v62, %s2112_s16  ;;  %885 = vrot.lane.b32.xlu0 %v697_v57, %s3061_s14 }
  0x71   : > { %780 = vrot.lane.b32.xlu1 %v2407_v62, %s3060_s1  ;;  %733 = vrot.lane.b32.xlu0 %v697_v57, %s3062_s8  ;;  %v710_v57 = vsel %vm682_vm2, %v708_v52, %v709_v53 }
  0x75   : > { %986 = vrot.lane.b32.xlu1 %v611_v2, %s2113_s22  ;;  %934 = vrot.lane.b32.xlu0 %v2410_v63, %s2112_s16 }
  0x79   : > { %834 = vrot.lane.b32.xlu1 %v611_v2, %s2109_s21  ;;  %782 = vrot.lane.b32.xlu0 %v2410_v63, %s3060_s1 }
  0x7d   : > { %1039 = vrot.lane.b32.xlu1 %v700_v9, %s2114_s10  ;;  %988 = vrot.lane.b32.xlu0 %v613_v10, %s2113_s22 }
  0x81   : > { %836 = vrot.lane.b32.xlu1 %v613_v10, %s2109_s21  ;;  %646 = vrot.lane.b32.xlu0 %v611_v2, %s2108_s19 }
  0x85   : > { %1041 = vrot.lane.b32.xlu1 %v702_v12, %s2114_s10  ;;  %887 = vrot.lane.b32.xlu0 %v700_v9, %s3061_s14 }
  0x89   : > { %735 = vrot.lane.b32.xlu1 %v700_v9, %s3062_s8  ;;  %648 = vrot.lane.b32.xlu0 %v613_v10, %s2108_s19  ;;  %v459_v10 = vld [vmem:[%s2290_s30 + $0x58] sm:$0xff] }
  0x8a   : > { %v518_v14 = vrot.slane %v459_v10, 7 }
  0x8d   : > { %936 = vrot.lane.b32.xlu1 %v2444_v17, %s2112_s16  ;;  %889 = vrot.lane.b32.xlu0 %v702_v12, %s3061_s14 }
  0x91   : > { %784 = vrot.lane.b32.xlu1 %v2444_v17, %s3060_s1  ;;  %737 = vrot.lane.b32.xlu0 %v702_v12, %s3062_s8 }
  0x95   : > { %990 = vrot.lane.b32.xlu1 %v616_v23, %s2113_s22  ;;  %938 = vrot.lane.b32.xlu0 %v2447_v18, %s2112_s16 }
  0x99   : > { %838 = vrot.lane.b32.xlu1 %v616_v23, %s2109_s21  ;;  %786 = vrot.lane.b32.xlu0 %v2447_v18, %s3060_s1 }
  0x9d   : > { %1043 = vrot.lane.b32.xlu1 %v705_v28, %s2114_s10  ;;  %992 = vrot.lane.b32.xlu0 %v618_v29, %s2113_s22 }
  0xa1   : > { %840 = vrot.lane.b32.xlu1 %v618_v29, %s2109_s21  ;;  %650 = vrot.lane.b32.xlu0 %v616_v23, %s2108_s19 }
  0xa5   : > { %1045 = vrot.lane.b32.xlu1 %v707_v31, %s2114_s10  ;;  %891 = vrot.lane.b32.xlu0 %v705_v28, %s3061_s14 }
  0xa7   : > { %v773_v35 = vpop.permute.xlu0 %772  ;;  %v2479_v36 = vpop.permute.xlu1 %774 }
  0xa9   : > { %739 = vrot.lane.b32.xlu1 %v705_v28, %s3062_s8  ;;  %652 = vrot.lane.b32.xlu0 %v618_v29, %s2108_s19 }
  0xab   : > { %v2486_v41 = vpop.permute.xlu1 %638  ;;  %v827_v42 = vpop.permute.xlu0 %826 }
  0xad   : > { %940 = vrot.lane.b32.xlu1 %v2484_v40, %s2112_s16  ;;  %893 = vrot.lane.b32.xlu0 %v707_v31, %s3061_s14 }
  0xaf   : > { %v880_v46 = vpop.permute.xlu1 %879  ;;  %v2496_v47 = vpop.permute.xlu0 %828 }
  0xb1   : > { %788 = vrot.lane.b32.xlu1 %v2484_v40, %s3060_s1  ;;  %741 = vrot.lane.b32.xlu0 %v707_v31, %s3062_s8 }
  0xb3   : > { %v2502_v49 = vpop.permute.xlu1 %727  ;;  %v2504_v50 = vpop.permute.xlu0 %640 }
  0xb5   : > { %994 = vrot.lane.b32.xlu1 %v621_v48, %s2113_s22  ;;  %942 = vrot.lane.b32.xlu0 %v2489_v43, %s2112_s16 }
  0xb7   : > { %v724_v55 = vpop.permute.xlu1 %723  ;;  %v635_v56 = vpop.permute.xlu0 %634 }
  0xb8   : > { %v1084_v2 = vsel %vm1083_vm4, %v2326_v19, %v635_v56  ;;  %v517_v19 = vrot.slane %v458_v8, 7  ;;  %v461_v8 = vld [vmem:[%s2290_s30 + $0x68] sm:$0xff] }
  0xb9   : > { %842 = vrot.lane.b32.xlu1 %v621_v48, %s2109_s21  ;;  %790 = vrot.lane.b32.xlu0 %v2489_v43, %s3060_s1  ;;  %v1101_v9 = vsel %vm1100_vm5, %v1084_v2, %v724_v55 }
  0xba   : > { %v1118_v11 = vsel %vm1117_vm6, %v1101_v9, %v773_v35  ;;  %v2540_v21 = vsel %vm498_vm0, 0.0, %v517_v19  ;;  %v2547_v24 = vsel %vm498_vm0, %v517_v19, %v518_v14 }
  0xbb   : > { %v726_v59 = vpop.permute.xlu1 %725  ;;  %v637_v60 = vpop.permute.xlu0 %636  ;;  %v1135_v16 = vsel %vm1134_vm7, %v1118_v11, %v827_v42  ;;  %v624_v27 = vrot.slane %v2540_v21, 1  ;;  %v625_v28 = vrot.slane %v2547_v24, 1  ;;  %v573_v42 = vsel %vm498_vm0, %v518_v14, 0.0 }
  0xbc   : > { %v1085_v15 = vsel %vm1083_vm4, %v2331_v20, %v637_v60  ;;  %v1152_v25 = vsel %vm1151_vm8, %v1135_v16, %v880_v46  ;;  %v713_v46 = vrot.slane %v2540_v21, 2  ;;  %v521_v11 = vrot.slane %v461_v8, 7  ;;  %v463_v8 = vld [vmem:[%s2290_s30 + $0x78] sm:$0xff] }
  0xbd   : > { %1047 = vrot.lane.b32.xlu1 %v710_v57, %s2114_s10  ;;  %996 = vrot.lane.b32.xlu0 %v623_v58, %s2113_s22  ;;  %v1102_v20 = vsel %vm1100_vm5, %v1085_v15, %v726_v59  ;;  %v626_v35 = vsel %vm593_vm1, %v624_v27, %v625_v28  ;;  %v716_v59 = vrot.slane %v573_v42, 2 }
  0xbe   : > { %v1119_v29 = vsel %vm1117_vm6, %v1102_v20, %v2479_v36 }
  0xbf   : > { %v929_v0 = vpop.permute.xlu1 %928  ;;  %v882_v1 = vpop.permute.xlu0 %881  ;;  %v1136_v34 = vsel %vm1134_vm7, %v1119_v29, %v2496_v47  ;;  %v714_v47 = vrot.slane %v2547_v24, 2 }
  0xc0   : > { %v1169_v26 = vsel %vm1168_vm9, %v1152_v25, %v929_v0  ;;  %v1153_v44 = vsel %vm1151_vm8, %v1136_v34, %v882_v1 }
  0xc1   : > { %844 = vrot.lane.b32.xlu1 %v623_v58, %s2109_s21  ;;  %654 = vrot.lane.b32.xlu0 %v621_v48, %s2108_s19  ;;  %v627_v48 = vrot.slane %v573_v42, 1  ;;  %v715_v55 = vsel %vm682_vm2, %v713_v46, %v714_v47  ;;  %v717_v0 = vsel %vm682_vm2, %v714_v47, %v716_v59 }
  0xc3   : > { %v2524_v6 = vpop.permute.xlu1 %776  ;;  %v2526_v7 = vpop.permute.xlu0 %729  ;;  %v628_v56 = vsel %vm593_vm1, %v625_v28, %v627_v48 }
  0xc5   : > { %1049 = vrot.lane.b32.xlu1 %v712_v3, %s2114_s10  ;;  %895 = vrot.lane.b32.xlu0 %v710_v57, %s3061_s14 }
  0xc7   : > { %v983_v12 = vpop.permute.xlu1 %982  ;;  %v931_v13 = vpop.permute.xlu0 %930 }
  0xc8   : > { %v1186_v30 = vsel %vm1185_vm10, %v1169_v26, %v983_v12  ;;  %v1170_v45 = vsel %vm1168_vm9, %v1153_v44, %v931_v13  ;;  %v1086_v12 = vsel %vm1083_vm4, %v2297_v4, %v2486_v41 }
  0xc9   : > { %743 = vrot.lane.b32.xlu1 %v710_v57, %s3062_s8  ;;  %656 = vrot.lane.b32.xlu0 %v623_v58, %s2108_s19  ;;  %v1103_v13 = vsel %vm1100_vm5, %v1086_v12, %v2502_v49 }
  0xca   : > { %v1120_v15 = vsel %vm1117_vm6, %v1103_v13, %v2524_v6 }
  0xcb   : > { %v2542_v22 = vpop.permute.xlu1 %830  ;;  %v2544_v23 = vpop.permute.xlu0 %778 }
  0xcc   : > { %v1137_v4 = vsel %vm1134_vm7, %v1120_v15, %v2542_v22  ;;  %v1087_v22 = vsel %vm1083_vm4, %v2300_v5, %v2504_v50  ;;  %v574_v5 = vsel %vm498_vm0, %v521_v11, 0.0 }
  0xcd   : > { %944 = vrot.lane.b32.xlu1 %v2540_v21, %s2112_s16  ;;  %897 = vrot.lane.b32.xlu0 %v712_v3, %s3061_s14 }
  0xcf   : > { %v1036_v31 = vpop.permute.xlu1 %1035  ;;  %v985_v32 = vpop.permute.xlu0 %984 }
  0xd0   : > { %v1203_v33 = vsel %vm1202_vm11, %v1186_v30, %v1036_v31  ;;  %v1187_v51 = vsel %vm1185_vm10, %v1170_v45, %v985_v32  ;;  %v1104_v31 = vsel %vm1100_vm5, %v1087_v22, %v2526_v7  ;;  %v632_v45 = vrot.slane %v574_v5, 1 }
  0xd1   : > { %792 = vrot.lane.b32.xlu1 %v2540_v21, %s3060_s1  ;;  %745 = vrot.lane.b32.xlu0 %v712_v3, %s3062_s8  ;;  %v460_v3 = vld [vmem:[%s2290_s30 + $0x60] sm:$0xff] }
  0xd2   : > { %1795 = vmatprep.mubr.msk.f32.mxu0 %vm1224_vm12, %v1203_v33  ;;  %v520_v9 = vrot.slane %v460_v3, 7  ;;  %v1121_v33 = vsel %vm1117_vm6, %v1104_v31, %v2544_v23  ;;  %v462_v3 = vld [vmem:[%s2290_s30 + $0x70] sm:$0xff]  ;;  %s1731_s30 = sshll.u32 %s3089_s13, 1 }
  0xd3   : > { %v2568_v36 = vpop.permute.xlu1 %832  ;;  %v2570_v38 = vpop.permute.xlu0 %642  ;;  %s438_s15 = sadd.s32 %s1731_s30, %s2284_s18 }
  0xd4   : > { %v2613_v14 = vsel %vm498_vm0, 0.0, %v520_v9  ;;  %v2622_v25 = vsel %vm498_vm0, %v520_v9, %v521_v11  ;;  %v1138_v50 = vsel %vm1134_vm7, %v1121_v33, %v2568_v36  ;;  %v523_v9 = vrot.slane %v462_v3, 7  ;;  %s1950_s18 = scalar_select %p472_p10, 0, 255 }
  0xd5   : > { %998 = vrot.lane.b32.xlu1 %v626_v35, %s2113_s22  ;;  %946 = vrot.lane.b32.xlu0 %v2547_v24, %s2112_s16  ;;  %v629_v6 = vrot.slane %v2613_v14, 1  ;;  %v630_v26 = vrot.slane %v2622_v25, 1  ;;  %v718_v23 = vrot.slane %v2613_v14, 2  ;;  %v719_v44 = vrot.slane %v2622_v25, 2 }
  0xd6   : > { %v524_v11 = vrot.slane %v463_v8, 7  ;;  %v1088_v12 = vsel %vm1083_vm4, %v2349_v37, %v2570_v38  ;;  %v565_v15 = vsel %vm498_vm0, 0.0, %v523_v9 }
  0xd7   : > { %v1038_v52 = vpop.permute.xlu1 %1037  ;;  %v884_v53 = vpop.permute.xlu0 %883  ;;  %v631_v32 = vsel %vm593_vm1, %v629_v6, %v630_v26 }
  0xd8   : > { %v1204_v54 = vsel %vm1202_vm11, %v1187_v51, %v1038_v52  ;;  %v1154_v41 = vsel %vm1151_vm8, %v1137_v4, %v884_v53  ;;  %v720_v51 = vsel %vm682_vm2, %v718_v23, %v719_v44  ;;  %v633_v52 = vsel %vm593_vm1, %v630_v26, %v632_v45 }
  0xd9   : > { %846 = vrot.lane.b32.xlu1 %v626_v35, %s2109_s21  ;;  %794 = vrot.lane.b32.xlu0 %v2547_v24, %s3060_s1  ;;  %v525_v6 = vsel %vm498_vm0, %v523_v9, %v524_v11 }
  0xda   : > { %1796 = vmatmul.mubr.msk.f32.vlgmr.msra.gmra.mrb[0].mxu0 %vm1224_vm12, %v1204_v54  ;;  %v822_v26 = vrot.slane %v525_v6, 1 }
  0xdb   : > { %v2588_v57 = vpop.permute.xlu1 %731  ;;  %v2590_v58 = vpop.permute.xlu0 %644 }
  0xdc   : > { %v1105_v13 = vsel %vm1100_vm5, %v1088_v12, %v2588_v57 }
  0xdd   : > { %1051 = vrot.lane.b32.xlu1 %v715_v55, %s2114_s10  ;;  %1000 = vrot.lane.b32.xlu0 %v628_v56, %s2113_s22 }
  0xdf   : > { %v933_v60 = vpop.permute.xlu1 %932  ;;  %v886_v61 = vpop.permute.xlu0 %885 }
  0xe0   : > { %v1171_v49 = vsel %vm1168_vm9, %v1154_v41, %v933_v60  ;;  %v1155_v42 = vsel %vm1151_vm8, %v1138_v50, %v886_v61 }
  0xe1   : > { %848 = vrot.lane.b32.xlu1 %v628_v56, %s2109_s21  ;;  %658 = vrot.lane.b32.xlu0 %v626_v35, %s2108_s19 }
  0xe3   : > { %v2597_v1 = vpop.permute.xlu1 %780  ;;  %v2599_v2 = vpop.permute.xlu0 %733 }
  0xe4   : > { %v1122_v4 = vsel %vm1117_vm6, %v1105_v13, %v2597_v1  ;;  %v821_v1 = vrot.slane %v565_v15, 1 }
  0xe5   : > { %1053 = vrot.lane.b32.xlu1 %v717_v0, %s2114_s10  ;;  %899 = vrot.lane.b32.xlu0 %v715_v55, %s3061_s14 }
  0xe6   : > { %v823_v31 = vsel %vm593_vm1, %v821_v1, %v822_v26 }
  0xe7   : > { %v987_v10 = vpop.permute.xlu1 %986  ;;  %v935_v19 = vpop.permute.xlu0 %934 }
  0xe8   : > { %v1188_v27 = vsel %vm1185_vm10, %v1171_v49, %v987_v10  ;;  %v1172_v7 = vsel %vm1168_vm9, %v1155_v42, %v935_v19  ;;  %v875_v42 = vrot.slane %v525_v6, 2 }
  0xe9   : > { %747 = vrot.lane.b32.xlu1 %v715_v55, %s3062_s8  ;;  %660 = vrot.lane.b32.xlu0 %v628_v56, %s2108_s19  ;;  %v721_v55 = vrot.slane %v574_v5, 2 }
  0xeb   : > { %v2617_v16 = vpop.permute.xlu1 %834  ;;  %v2619_v20 = vpop.permute.xlu0 %782  ;;  %v722_v60 = vsel %vm682_vm2, %v719_v44, %v721_v55 }
  0xec   : > { %v1139_v37 = vsel %vm1134_vm7, %v1122_v4, %v2617_v16  ;;  %v1089_v16 = vsel %vm1083_vm4, %v2353_v39, %v2590_v58  ;;  %v575_v39 = vsel %vm498_vm0, %v524_v11, 0.0 }
  0xed   : > { %948 = vrot.lane.b32.xlu1 %v2613_v14, %s2112_s16  ;;  %901 = vrot.lane.b32.xlu0 %v717_v0, %s3061_s14  ;;  %v1106_v22 = vsel %vm1100_vm5, %v1089_v16, %v2599_v2  ;;  %v877_v55 = vrot.slane %v575_v39, 2 }
  0xef   : > { %v1040_v28 = vpop.permute.xlu1 %1039  ;;  %v989_v29 = vpop.permute.xlu0 %988  ;;  %v878_v8 = vsel %vm682_vm2, %v875_v42, %v877_v55 }
  0xf0   : > { %v1205_v30 = vsel %vm1202_vm11, %v1188_v27, %v1040_v28  ;;  %v1189_v46 = vsel %vm1185_vm10, %v1172_v7, %v989_v29  ;;  %v824_v7 = vrot.slane %v575_v39, 1 }
  0xf1   : > { %796 = vrot.lane.b32.xlu1 %v2613_v14, %s3060_s1  ;;  %749 = vrot.lane.b32.xlu0 %v717_v0, %s3062_s8 }
  0xf2   : > { %1798 = vmatprep.mubr.msk.f32.mxu0 %vm1224_vm12, %v1205_v30 }
  0xf3   : > { %v2647_v34 = vpop.permute.xlu1 %836  ;;  %v2649_v35 = vpop.permute.xlu0 %646 }
  0xf5   : > { %1002 = vrot.lane.b32.xlu1 %v631_v32, %s2113_s22  ;;  %950 = vrot.lane.b32.xlu0 %v2622_v25, %s2112_s16 }
  0xf7   : > { %v1042_v47 = vpop.permute.xlu1 %1041  ;;  %v888_v48 = vpop.permute.xlu0 %887 }
  0xf8   : > { %v1206_v36 = vsel %vm1202_vm11, %v1189_v46, %v1042_v47  ;;  %v1156_v38 = vsel %vm1151_vm8, %v1139_v37, %v888_v48  ;;  %v825_v47 = vsel %vm593_vm1, %v822_v26, %v824_v7 }
  0xf9   : > { %850 = vrot.lane.b32.xlu1 %v631_v32, %s2109_s21  ;;  %798 = vrot.lane.b32.xlu0 %v2622_v25, %s3060_s1 }
  0xfa   : > { %1799 = vmatmul.mubr.msk.f32.gmra.mrb[2].mxu0 %vm1224_vm12, %v1206_v36 }
  0xfb   : > { %v2669_v53 = vpop.permute.xlu1 %735  ;;  %v2671_v54 = vpop.permute.xlu0 %648 }
  0xfd   : > { %1055 = vrot.lane.b32.xlu1 %v720_v51, %s2114_s10  ;;  %1004 = vrot.lane.b32.xlu0 %v633_v52, %s2113_s22 }
  0xff   : > { %v937_v56 = vpop.permute.xlu1 %936  ;;  %v890_v59 = vpop.permute.xlu0 %889 }
 0x100   : > { %v1173_v57 = vsel %vm1168_vm9, %v1156_v38, %v937_v56  ;;  %v1090_v38 = vsel %vm1083_vm4, %v2407_v62, %v2649_v35 }
 0x101   : > { %852 = vrot.lane.b32.xlu1 %v633_v52, %s2109_s21  ;;  %662 = vrot.lane.b32.xlu0 %v631_v32, %s2108_s19  ;;  %v1123_v32 = vsel %vm1117_vm6, %v1106_v22, %v2619_v20  ;;  %v874_v20 = vrot.slane %v565_v15, 2  ;;  %v1107_v26 = vsel %vm1100_vm5, %v1090_v38, %v2669_v53 }
 0x102   : > { %v1140_v58 = vsel %vm1134_vm7, %v1123_v32, %v2647_v34 }
 0x103   : > { %v2679_v61 = vpop.permute.xlu1 %784  ;;  %v2681_v0 = vpop.permute.xlu0 %737  ;;  %v1157_v2 = vsel %vm1151_vm8, %v1140_v58, %v890_v59  ;;  %v876_v46 = vsel %vm682_vm2, %v874_v20, %v875_v42 }
 0x105   : > { %1057 = vrot.lane.b32.xlu1 %v722_v60, %s2114_s10  ;;  %903 = vrot.lane.b32.xlu0 %v720_v51, %s3061_s14 }
 0x107   : > { %v991_v10 = vpop.permute.xlu1 %990  ;;  %v939_v19 = vpop.permute.xlu0 %938 }
 0x108   : > { %v1190_v27 = vsel %vm1185_vm10, %v1173_v57, %v991_v10  ;;  %v1174_v50 = vsel %vm1168_vm9, %v1157_v2, %v939_v19 }
 0x109   : > { %751 = vrot.lane.b32.xlu1 %v720_v51, %s3062_s8  ;;  %664 = vrot.lane.b32.xlu0 %v633_v52, %s2108_s19  ;;  %s1733_s19 = sshll.u32 %s438_s15, 3 }
 0x10a   : > { %s440_s5 = scalar_lea.vmem %s3025_s2, %s1733_s19 }
 0x10b   : > { %v2703_v41 = vpop.permute.xlu1 %838  ;;  %v2705_v49 = vpop.permute.xlu0 %786  ;;  %v1951_v51 = vld [vmem:[%s440_s5] sm:%s1950_s18]  ;;  %v1954_v52 = vld [vmem:[%s440_s5 + $0x8] sm:%s1950_s18] }
 0x10c   : > { %v527_v3 = vrot.slane %v1954_v52, 7 }
 0x10d   : > { %952 = vrot.lane.b32.xlu1 %v565_v15, %s2112_s16  ;;  %905 = vrot.lane.b32.xlu0 %v722_v60, %s3061_s14 }
 0x10e   : > { %v576_v12 = vsel %vm498_vm0, %v527_v3, 0.0 }
 0x10f   : > { %v1044_v28 = vpop.permute.xlu1 %1043  ;;  %v993_v29 = vpop.permute.xlu0 %992  ;;  %v980_v4 = vrot.slane %v576_v12, 1 }
 0x110   : > { %v1207_v30 = vsel %vm1202_vm11, %v1190_v27, %v1044_v28  ;;  %v1191_v23 = vsel %vm1185_vm10, %v1174_v50, %v993_v29  ;;  %v1033_v29 = vrot.slane %v576_v12, 2 }
 0x111   : > { %800 = vrot.lane.b32.xlu1 %v565_v15, %s3060_s1  ;;  %753 = vrot.lane.b32.xlu0 %v722_v60, %s3062_s8  ;;  %v526_v60 = vrot.slane %v1951_v51, 7 }
 0x112   : > { %1801 = vmatprep.mubr.msk.f32.mxu0 %vm1224_vm12, %v1207_v30  ;;  %v1124_v30 = vsel %vm1117_vm6, %v1107_v26, %v2679_v61 }
 0x113   : > { %v2729_v33 = vpop.permute.xlu1 %840  ;;  %v2731_v5 = vpop.permute.xlu0 %650  ;;  %v528_v19 = vsel %vm498_vm0, %v526_v60, %v527_v3  ;;  %v566_v11 = vsel %vm498_vm0, 0.0, %v526_v60  ;;  %v1141_v62 = vsel %vm1134_vm7, %v1124_v30, %v2703_v41  ;;  %v1091_v41 = vsel %vm1083_vm4, %v2410_v63, %v2671_v54 }
 0x114   : > { %v978_v13 = vrot.slane %v528_v19, 1  ;;  %v977_v15 = vrot.slane %v566_v11, 1  ;;  %v1031_v57 = vrot.slane %v528_v19, 2  ;;  %v1030_v1 = vrot.slane %v566_v11, 2 }
 0x115   : > { %1006 = vrot.lane.b32.xlu1 %v823_v31, %s2113_s22  ;;  %954 = vrot.lane.b32.xlu0 %v525_v6, %s2112_s16  ;;  %v1108_v50 = vsel %vm1100_vm5, %v1091_v41, %v2681_v0 }
 0x116   : > { %v981_v27 = vsel %vm593_vm1, %v978_v13, %v980_v4  ;;  %v979_v28 = vsel %vm593_vm1, %v977_v15, %v978_v13  ;;  %v1032_v32 = vsel %vm682_vm2, %v1030_v1, %v1031_v57  ;;  %v1125_v20 = vsel %vm1117_vm6, %v1108_v50, %v2705_v49 }
 0x117   : > { %v1046_v44 = vpop.permute.xlu1 %1045  ;;  %v892_v45 = vpop.permute.xlu0 %891 }
 0x118   : > { %v1208_v34 = vsel %vm1202_vm11, %v1191_v23, %v1046_v44  ;;  %v1158_v35 = vsel %vm1151_vm8, %v1141_v62, %v892_v45  ;;  %v1142_v23 = vsel %vm1134_vm7, %v1125_v20, %v2729_v33 }
 0x119   : > { %854 = vrot.lane.b32.xlu1 %v823_v31, %s2109_s21  ;;  %802 = vrot.lane.b32.xlu0 %v525_v6, %s3060_s1  ;;  %v1034_v31 = vsel %vm682_vm2, %v1031_v57, %v1033_v29  ;;  %s2914_s1 = scalar_lea.vmem [#allocation4], %s2369_s11 }
 0x11a   : > { %1802 = vmatmul.mubr.msk.f32.gmra.mrb[4].mxu0 %vm1224_vm12, %v1208_v34 }
 0x11b   : > { %v2753_v48 = vpop.permute.xlu1 %739  ;;  %v2755_v36 = vpop.permute.xlu0 %652 }
 0x11d   : > { %1059 = vrot.lane.b32.xlu1 %v876_v46, %s2114_s10  ;;  %1008 = vrot.lane.b32.xlu0 %v825_v47, %s2113_s22 }
 0x11f   : > { %v941_v56 = vpop.permute.xlu1 %940  ;;  %v894_v59 = vpop.permute.xlu0 %893 }
 0x120   : > { %v1175_v53 = vsel %vm1168_vm9, %v1158_v35, %v941_v56  ;;  %v1159_v44 = vsel %vm1151_vm8, %v1142_v23, %v894_v59  ;;  %v1092_v59 = vsel %vm1083_vm4, %v2444_v17, %v2731_v5  ;;  %v1093_v17 = vsel %vm1083_vm4, %v2447_v18, %v2755_v36 }
 0x121   : > { %907 = vrot.lane.b32.xlu1 %v876_v46, %s3061_s14  ;;  %856 = vrot.lane.b32.xlu0 %v825_v47, %s2109_s21  ;;  %v1109_v60 = vsel %vm1100_vm5, %v1092_v59, %v2753_v48  ;;  %s390_s21 = sand.u32 1, %s2081_s27  }
 0x123   : > { %v789_v9 = vpop.permute.xlu1 %788  ;;  %v2762_v10 = vpop.permute.xlu0 %741 }
 0x124   : > { %v1126_v3 = vsel %vm1117_vm6, %v1109_v60, %v789_v9  ;;  %v1110_v5 = vsel %vm1100_vm5, %v1093_v17, %v2762_v10 }
 0x125   : > { %909 = vrot.lane.b32.xlu1 %v878_v8, %s3061_s14  ;;  %1061 = vrot.lane.b32.xlu0 %v878_v8, %s2114_s10 }
 0x127   : > { %v995_v6 = vpop.permute.xlu1 %994  ;;  %v943_v37 = vpop.permute.xlu0 %942 }
 0x128   : > { %v1192_v39 = vsel %vm1185_vm10, %v1175_v53, %v995_v6  ;;  %v1176_v63 = vsel %vm1168_vm9, %v1159_v44, %v943_v37 }
 0x129   : > { %958 = vrot.lane.b32.xlu1 %v528_v19, %s2112_s16  ;;  %956 = vrot.lane.b32.xlu0 %v566_v11, %s2112_s16  ;;  %s1711_s16 = sshll.u32 %s390_s21, 7 }
 0x12b   : > { %v843_v16 = vpop.permute.xlu1 %842  ;;  %v791_v22 = vpop.permute.xlu0 %790 }
 0x12c   : > { %v1143_v11 = vsel %vm1134_vm7, %v1126_v3, %v843_v16  ;;  %v1127_v48 = vsel %vm1117_vm6, %v1110_v5, %v791_v22 }
 0x12d   : > { %1012 = vrot.lane.b32.xlu1 %v981_v27, %s2113_s22  ;;  %1010 = vrot.lane.b32.xlu0 %v979_v28, %s2113_s22  ;;  %s2894_s22 = scalar_lea.vmem [#allocation2], %s1711_s16 }
 0x12f   : > { %v1048_v61 = vpop.permute.xlu1 %1047  ;;  %v997_v58 = vpop.permute.xlu0 %996 }
 0x130   : > { %v1209_v2 = vsel %vm1202_vm11, %v1192_v39, %v1048_v61  ;;  %v1193_v54 = vsel %vm1185_vm10, %v1176_v63, %v997_v58 }
 0x131   : > { %1065 = vrot.lane.b32.xlu1 %v1034_v31, %s2114_s10  ;;  %1063 = vrot.lane.b32.xlu0 %v1032_v32, %s2114_s10 }
 0x132   : > { %1804 = vmatprep.mubr.msk.f32.mxu0 %vm1224_vm12, %v1209_v2 }
 0x133   : > { %v845_v42 = vpop.permute.xlu1 %844  ;;  %v655_v7 = vpop.permute.xlu0 %654 }
 0x134   : > { %v1144_v57 = vsel %vm1134_vm7, %v1127_v48, %v845_v42  ;;  %v1094_v31 = vsel %vm1083_vm4, %v2484_v40, %v655_v7 }
 0x137   : > { %v1050_v45 = vpop.permute.xlu1 %1049  ;;  %v896_v34 = vpop.permute.xlu0 %895 }
 0x138   : > { %v1210_v0 = vsel %vm1202_vm11, %v1193_v54, %v1050_v45  ;;  %v1160_v12 = vsel %vm1151_vm8, %v1143_v11, %v896_v34 }
 0x139   : > { %1805 = vmatmul.mubr.msk.f32.gmra.mrb[6].mxu0 %vm1224_vm12, %v1210_v0 }
 0x13b   : > { %v744_v46 = vpop.permute.xlu1 %743  ;;  %v657_v47 = vpop.permute.xlu0 %656 }
 0x13c   : > { %v1111_v32 = vsel %vm1100_vm5, %v1094_v31, %v744_v46  ;;  %v1095_v40 = vsel %vm1083_vm4, %v2489_v43, %v657_v47 }
 0x13f   : > { %v945_v49 = vpop.permute.xlu1 %944  ;;  %v898_v51 = vpop.permute.xlu0 %897 }
 0x140   : > { %v1177_v13 = vsel %vm1168_vm9, %v1160_v12, %v945_v49  ;;  %v1161_v1 = vsel %vm1151_vm8, %v1144_v57, %v898_v51 }
 0x143   : > { %v793_v52 = vpop.permute.xlu1 %792  ;;  %v746_v55 = vpop.permute.xlu0 %745 }
 0x144   : > { %v1128_v39 = vsel %vm1117_vm6, %v1111_v32, %v793_v52  ;;  %v1112_v7 = vsel %vm1100_vm5, %v1095_v40, %v746_v55 }
 0x147   : > { %v999_v56 = vpop.permute.xlu1 %998  ;;  %v947_v33 = vpop.permute.xlu0 %946 }
 0x148   : > { %v1194_v15 = vsel %vm1185_vm10, %v1177_v13, %v999_v56  ;;  %v1178_v26 = vsel %vm1168_vm9, %v1161_v1, %v947_v33 }
 0x14b   : > { %v847_v8 = vpop.permute.xlu1 %846  ;;  %v795_v19 = vpop.permute.xlu0 %794 }
 0x14c   : > { %v1145_v2 = vsel %vm1134_vm7, %v1128_v39, %v847_v8  ;;  %v1129_v63 = vsel %vm1117_vm6, %v1112_v7, %v795_v19 }
 0x14f   : > { %v1052_v4 = vpop.permute.xlu1 %1051  ;;  %v1001_v6 = vpop.permute.xlu0 %1000 }
 0x150   : > { %v1211_v37 = vsel %vm1202_vm11, %v1194_v15, %v1052_v4  ;;  %v1195_v27 = vsel %vm1185_vm10, %v1178_v26, %v1001_v6 }
 0x151   : > { %1807 = vmatprep.mubr.msk.f32.mxu1 %vm1224_vm12, %v1211_v37 }
 0x153   : > { %v849_v9 = vpop.permute.xlu1 %848  ;;  %v659_v38 = vpop.permute.xlu0 %658 }
 0x154   : > { %v1146_v34 = vsel %vm1134_vm7, %v1129_v63, %v849_v9  ;;  %v1096_v19 = vsel %vm1083_vm4, %v2540_v21, %v659_v38 }
 0x157   : > { %v1054_v28 = vpop.permute.xlu1 %1053  ;;  %v900_v29 = vpop.permute.xlu0 %899 }
 0x158   : > { %v1212_v18 = vsel %vm1202_vm11, %v1195_v27, %v1054_v28  ;;  %v1162_v41 = vsel %vm1151_vm8, %v1145_v2, %v900_v29 }
 0x159   : > { %1808 = vmatmul.mubr.msk.f32.vlgmr.msra.gmra.mrb[0].mxu1 %vm1224_vm12, %v1212_v18 }
 0x15b   : > { %v748_v36 = vpop.permute.xlu1 %747  ;;  %v661_v10 = vpop.permute.xlu0 %660 }
 0x15c   : > { %v1113_v11 = vsel %vm1100_vm5, %v1096_v19, %v748_v36  ;;  %v1097_v21 = vsel %vm1083_vm4, %v2547_v24, %v661_v10 }
 0x15f   : > { %v949_v30 = vpop.permute.xlu1 %948  ;;  %v902_v16 = vpop.permute.xlu0 %901 }
 0x160   : > { %v1179_v50 = vsel %vm1168_vm9, %v1162_v41, %v949_v30  ;;  %v1163_v0 = vsel %vm1151_vm8, %v1146_v34, %v902_v16 }
 0x163   : > { %v797_v22 = vpop.permute.xlu1 %796  ;;  %v750_v62 = vpop.permute.xlu0 %749 }
 0x164   : > { %v1130_v12 = vsel %vm1117_vm6, %v1113_v11, %v797_v22  ;;  %v1114_v38 = vsel %vm1100_vm5, %v1097_v21, %v750_v62 }
 0x167   : > { %v1003_v35 = vpop.permute.xlu1 %1002  ;;  %v951_v53 = vpop.permute.xlu0 %950 }
 0x168   : > { %v1196_v20 = vsel %vm1185_vm10, %v1179_v50, %v1003_v35  ;;  %v1180_v46 = vsel %vm1168_vm9, %v1163_v0, %v951_v53 }
 0x16b   : > { %v851_v61 = vpop.permute.xlu1 %850  ;;  %v799_v58 = vpop.permute.xlu0 %798 }
 0x16c   : > { %v1147_v4 = vsel %vm1134_vm7, %v1130_v12, %v851_v61  ;;  %v1131_v57 = vsel %vm1117_vm6, %v1114_v38, %v799_v58 }
 0x16f   : > { %v1056_v42 = vpop.permute.xlu1 %1055  ;;  %v1005_v23 = vpop.permute.xlu0 %1004 }
 0x170   : > { %v1213_v44 = vsel %vm1202_vm11, %v1196_v20, %v1056_v42  ;;  %v1197_v49 = vsel %vm1185_vm10, %v1180_v46, %v1005_v23 }
 0x171   : > { %1810 = vmatprep.mubr.msk.f32.mxu1 %vm1224_vm12, %v1213_v44 }
 0x173   : > { %v853_v54 = vpop.permute.xlu1 %852  ;;  %v663_v45 = vpop.permute.xlu0 %662 }
 0x174   : > { %v1148_v27 = vsel %vm1134_vm7, %v1131_v57, %v853_v54  ;;  %v1098_v22 = vsel %vm1083_vm4, %v2613_v14, %v663_v45 }
 0x177   : > { %v1058_v51 = vpop.permute.xlu1 %1057  ;;  %v904_v52 = vpop.permute.xlu0 %903 }
 0x178   : > { %v1214_v43 = vsel %vm1202_vm11, %v1197_v49, %v1058_v51  ;;  %v1164_v6 = vsel %vm1151_vm8, %v1147_v4, %v904_v52 }
 0x179   : > { %1811 = vmatmul.mubr.msk.f32.gmra.mrb[2].mxu1 %vm1224_vm12, %v1214_v43 }
 0x17b   : > { %v752_v47 = vpop.permute.xlu1 %751  ;;  %v665_v55 = vpop.permute.xlu0 %664 }
 0x17c   : > { %v1099_v62 = vsel %vm1083_vm4, %v2622_v25, %v665_v55  ;;  %v1115_v35 = vsel %vm1100_vm5, %v1098_v22, %v752_v47 }
 0x17f   : > { %v953_v56 = vpop.permute.xlu1 %952  ;;  %v906_v33 = vpop.permute.xlu0 %905 }
 0x180   : > { %v1181_v37 = vsel %vm1168_vm9, %v1164_v6, %v953_v56  ;;  %v1165_v28 = vsel %vm1151_vm8, %v1148_v27, %v906_v33 }
 0x183   : > { %v801_v59 = vpop.permute.xlu1 %800  ;;  %v754_v60 = vpop.permute.xlu0 %753 }
 0x184   : > { %v1116_v53 = vsel %vm1100_vm5, %v1099_v62, %v754_v60  ;;  %v1132_v31 = vsel %vm1117_vm6, %v1115_v35, %v801_v59 }
 0x187   : > { %v1007_v3 = vpop.permute.xlu1 %1006  ;;  %v955_v8 = vpop.permute.xlu0 %954 }
 0x188   : > { %v1198_v17 = vsel %vm1185_vm10, %v1181_v37, %v1007_v3  ;;  %v1182_v29 = vsel %vm1168_vm9, %v1165_v28, %v955_v8 }
 0x18b   : > { %v855_v13 = vpop.permute.xlu1 %854  ;;  %v803_v15 = vpop.permute.xlu0 %802 }
 0x18c   : > { %v1133_v32 = vsel %vm1117_vm6, %v1116_v53, %v803_v15  ;;  %v1149_v58 = vsel %vm1134_vm7, %v1132_v31, %v855_v13 }
 0x18f   : > { %v1060_v5 = vpop.permute.xlu1 %1059  ;;  %v1009_v48 = vpop.permute.xlu0 %1008 }
 0x190   : > { %v1215_v9 = vsel %vm1202_vm11, %v1198_v17, %v1060_v5  ;;  %v1199_v18 = vsel %vm1185_vm10, %v1182_v29, %v1009_v48 }
 0x191   : > { %1813 = vmatprep.mubr.msk.f32.mxu1 %vm1224_vm12, %v1215_v9 }
 0x193   : > { %v908_v1 = vpop.permute.xlu1 %907  ;;  %v857_v26 = vpop.permute.xlu0 %856 }
 0x194   : > { %v1150_v2 = vsel %vm1134_vm7, %v1133_v32, %v857_v26  ;;  %v1166_v14 = vsel %vm1151_vm8, %v1149_v58, %v908_v1 }
 0x197   : > { %v910_v36 = vpop.permute.xlu1 %909  ;;  %v1062_v30 = vpop.permute.xlu0 %1061 }
 0x198   : > { %v1216_v24 = vsel %vm1202_vm11, %v1199_v18, %v1062_v30  ;;  %v1167_v25 = vsel %vm1151_vm8, %v1150_v2, %v910_v36 }
 0x199   : > { %1814 = vmatmul.mubr.msk.f32.gmra.mrb[4].mxu1 %vm1224_vm12, %v1216_v24 }
 0x19b   : > { %v959_v10 = vpop.permute.xlu1 %958  ;;  %v957_v16 = vpop.permute.xlu0 %956 }
 0x19c   : > { %v1184_v41 = vsel %vm1168_vm9, %v1167_v25, %v959_v10  ;;  %v1183_v50 = vsel %vm1168_vm9, %v1166_v14, %v957_v16 }
 0x19f   : > { %v1013_v39 = vpop.permute.xlu1 %1012  ;;  %v1011_v61 = vpop.permute.xlu0 %1010 }
 0x1a0   : > { %v1201_v20 = vsel %vm1185_vm10, %v1184_v41, %v1013_v39  ;;  %v1200_v42 = vsel %vm1185_vm10, %v1183_v50, %v1011_v61 }
 0x1a3   : > { %v1066_v23 = vpop.permute.xlu1 %1065  ;;  %v1064_v44 = vpop.permute.xlu0 %1063 }
 0x1a4   : > { %v1218_v40 = vsel %vm1202_vm11, %v1201_v20, %v1066_v23  ;;  %v1217_v7 = vsel %vm1202_vm11, %v1200_v42, %v1064_v44 }
 0x1a5   : > { %1816 = vmatprep.mubr.msk.f32.mxu1 %vm1224_vm12, %v1217_v7 }
 0x1a6   : > { %1817 = vmatmul.mubr.msk.f32.gmra.mrb[6].mxu1 %vm1224_vm12, %v1218_v40 }
 0x1ad   : > { %v1797_v63 = vpop.f32.mrb[0].mxu0 }
 0x1ae   : > { %1423 = vst [vmem:[%s2894_s22 + $0x8] sm:$0xff] %v1797_v63  ;;  %v1460_v54 = vmul.f32 %v1797_v63, %v1797_v63  ;;  %v1343_v45 = vpop.f32.mrb[1].mxu0 }
 0x1af   : > { %1422 = vst [vmem:[%s2894_s22] sm:$0xff] %v1343_v45  ;;  %v1438_v34 = vadd.f32 %v1797_v63, %v1343_v45  ;;  %v1459_v0 = vmul.f32 %v1343_v45, %v1343_v45 }
 0x1b1   : > { %v1475_v46 = vadd.f32 %v1460_v54, %v1459_v0 }
 0x1cd   : > { %v1800_v49 = vpop.f32.mrb[2].mxu0 }
 0x1ce   : > { %1425 = vst [vmem:[%s2894_s22 + $0x18] sm:$0xff] %v1800_v49  ;;  %v1353_v51 = vpop.f32.mrb[3].mxu0  ;;  %v1462_v47 = vmul.f32 %v1800_v49, %v1800_v49 }
 0x1cf   : > { %1424 = vst [vmem:[%s2894_s22 + $0x10] sm:$0xff] %v1353_v51  ;;  %v1439_v52 = vadd.f32 %v1438_v34, %v1353_v51  ;;  %v1461_v43 = vmul.f32 %v1353_v51, %v1353_v51 }
 0x1d1   : > { %v1476_v55 = vadd.f32 %v1475_v46, %v1461_v43  ;;  %v1440_v56 = vadd.f32 %v1800_v49, %v1439_v52 }
 0x1d3   : > { %v1477_v33 = vadd.f32 %v1476_v55, %v1462_v47 }
 0x1ed   : > { %v1803_v59 = vpop.f32.mrb[4].mxu0 }
 0x1ee   : > { %1427 = vst [vmem:[%s2894_s22 + $0x28] sm:$0xff] %v1803_v59  ;;  %v1363_v60 = vpop.f32.mrb[5].mxu0  ;;  %v1464_v19 = vmul.f32 %v1803_v59, %v1803_v59 }
 0x1ef   : > { %1426 = vst [vmem:[%s2894_s22 + $0x20] sm:$0xff] %v1363_v60  ;;  %v1441_v3 = vadd.f32 %v1440_v56, %v1363_v60  ;;  %v1463_v8 = vmul.f32 %v1363_v60, %v1363_v60  ;;  %v2115_v56 = vmov (!%p1751_p0), 0.0  }
 0x1f0   : > { %1502 = vst [vmem:[%s2914_s1] sm:$0xff] (!%p1751_p0), %v2115_v56 }
 0x1f1   : > { %v1478_v11 = vadd.f32 %v1477_v33, %v1463_v8  ;;  %v1442_v12 = vadd.f32 %v1803_v59, %v1441_v3 }
 0x1f3   : > { %v1479_v13 = vadd.f32 %v1478_v11, %v1464_v19 }
 0x20c   : > { %v1806_v15 = vpop.f32.mrb[6].mxu0 }
 0x20d   : > { %1429 = vst [vmem:[%s2894_s22 + $0x38] sm:$0xff] %v1806_v15  ;;  %v1373_v4 = vpop.f32.mrb[7].mxu0  ;;  %v1466_v17 = vmul.f32 %v1806_v15, %v1806_v15 }
 0x20e   : > { %1428 = vst [vmem:[%s2894_s22 + $0x30] sm:$0xff] %v1373_v4  ;;  %v1443_v6 = vadd.f32 %v1442_v12, %v1373_v4  ;;  %v1465_v37 = vmul.f32 %v1373_v4, %v1373_v4 }
 0x210   : > { %v1444_v5 = vadd.f32 %v1806_v15, %v1443_v6  ;;  %v1480_v48 = vadd.f32 %v1479_v13, %v1465_v37 }
 0x212   : > { %v1481_v9 = vadd.f32 %v1480_v48, %v1466_v17 }
 0x22c   : > { %v1809_v21 = vpop.f32.mrb[0].mxu1 }
 0x22d   : > { %1431 = vst [vmem:[%s2894_s22 + $0x48] sm:$0xff] %v1809_v21  ;;  %v1383_v38 = vpop.f32.mrb[1].mxu1  ;;  %v1468_v26 = vmul.f32 %v1809_v21, %v1809_v21 }
 0x22e   : > { %1430 = vst [vmem:[%s2894_s22 + $0x40] sm:$0xff] %v1383_v38  ;;  %v1445_v57 = vadd.f32 %v1444_v5, %v1383_v38  ;;  %v1467_v1 = vmul.f32 %v1383_v38, %v1383_v38 }
 0x230   : > { %v1482_v27 = vadd.f32 %v1481_v9, %v1467_v1  ;;  %v1446_v28 = vadd.f32 %v1809_v21, %v1445_v57 }
 0x232   : > { %v1483_v29 = vadd.f32 %v1482_v27, %v1468_v26 }
 0x24c   : > { %v1812_v18 = vpop.f32.mrb[2].mxu1 }
 0x24d   : > { %1433 = vst [vmem:[%s2894_s22 + $0x58] sm:$0xff] %v1812_v18  ;;  %v1393_v36 = vpop.f32.mrb[3].mxu1  ;;  %v1470_v10 = vmul.f32 %v1812_v18, %v1812_v18 }
 0x24e   : > { %1432 = vst [vmem:[%s2894_s22 + $0x50] sm:$0xff] %v1393_v36  ;;  %v1447_v30 = vadd.f32 %v1446_v28, %v1393_v36  ;;  %v1469_v24 = vmul.f32 %v1393_v36, %v1393_v36 }
 0x250   : > { %v1484_v16 = vadd.f32 %v1483_v29, %v1469_v24  ;;  %v1448_v22 = vadd.f32 %v1812_v18, %v1447_v30 }
 0x252   : > { %v1485_v62 = vadd.f32 %v1484_v16, %v1470_v10 }
 0x26c   : > { %v1815_v35 = vpop.f32.mrb[4].mxu1 }
 0x26d   : > { %1435 = vst [vmem:[%s2894_s22 + $0x68] sm:$0xff] %v1815_v35  ;;  %v1403_v53 = vpop.f32.mrb[5].mxu1  ;;  %v1472_v39 = vmul.f32 %v1815_v35, %v1815_v35 }
 0x26e   : > { %1434 = vst [vmem:[%s2894_s22 + $0x60] sm:$0xff] %v1403_v53  ;;  %v1449_v31 = vadd.f32 %v1448_v22, %v1403_v53  ;;  %v1471_v32 = vmul.f32 %v1403_v53, %v1403_v53 }
 0x270   : > { %v1486_v61 = vadd.f32 %v1485_v62, %v1471_v32  ;;  %v1450_v58 = vadd.f32 %v1815_v35, %v1449_v31 }
 0x272   : > { %v1487_v2 = vadd.f32 %v1486_v61, %v1472_v39 }
 0x279   : > { %v1818_v14 = vpop.f32.mrb[6].mxu1 }
 0x27a   : > { %1437 = vst [vmem:[%s2894_s22 + $0x78] sm:$0xff] %v1818_v14  ;;  %v1413_v25 = vpop.f32.mrb[7].mxu1  ;;  %v1474_v20 = vmul.f32 %v1818_v14, %v1818_v14 }
 0x27b   : > { %1436 = vst [vmem:[%s2894_s22 + $0x70] sm:$0xff] %v1413_v25  ;;  %v1451_v41 = vadd.f32 %v1450_v58, %v1413_v25  ;;  %v1473_v50 = vmul.f32 %v1413_v25, %v1413_v25 }
 0x27d   : > { %v1452_v42 = vadd.f32 %v1818_v14, %v1451_v41  ;;  %v1488_v23 = vadd.f32 %v1487_v2, %v1473_v50 }
 0x27f   : > { %v1453_v44 = vrot.slane %v1452_v42, 4  ;;  %v1489_v40 = vadd.f32 %v1488_v23, %v1474_v20 }
 0x281   : > { %v1454_v7 = vadd.f32 %v1453_v44, %v1452_v42  ;;  %v1490_v63 = vrot.slane %v1489_v40, 4 }
 0x283   : > { %v1455_v54 = vrot.slane %v1454_v7, 2  ;;  %v1491_v45 = vadd.f32 %v1490_v63, %v1489_v40 }
 0x285   : > { %v1456_v34 = vadd.f32 %v1455_v54, %v1454_v7  ;;  %v1492_v0 = vrot.slane %v1491_v45, 2 }
 0x287   : > { %v1457_v46 = vrot.slane %v1456_v34, 1  ;;  %v1493_v49 = vadd.f32 %v1492_v0, %v1491_v45 }
 0x288   : > { %1501 = sbr.rel (%p1751_p0) target bundleno = 655 (0x28f), region = 48 }
 0x289   : > { %v1494_v51 = vrot.slane %v1493_v49, 1  ;;  %v1458_v52 = vadd.f32 %v1457_v46, %v1456_v34 }
 0x28b   : > { %v1495_v43 = vadd.f32 %v1494_v51, %v1493_v49 }
 0x28d   : > { %v1496_v47 = vsel %vm498_vm0, %v1458_v52, %v1495_v43 }
 0x28e   : > { %v1498_v55 = vsel %vm1497_vm13, %v1496_v47, 0.0 }
 0x28f PF: > { %v1503_v33 = vld [vmem:[%s2914_s1] sm:$0xff]  ;;  %s1763_s10 = sshll.u32 %s2089_s28, 4  ;;  %s1756_s14 = sshll.u32 %s2093_s29, 5 }
 0x290   : > { %v1504_v59 = vadd.f32 %v1503_v33, %v1498_v55  ;;  %s1528_s11 = sshll.u32 %s2894_s22, 4  ;;  %s1525_s30 = sadd.s32 %s1763_s10, %s1756_s14  ;;  %s2922_s11 = int_to_ptr.vmem [resolvable:$true] %s1528_s11 }
 0x291   : > { %s1757_s15 = sshll.u32 %s1525_s30, 7  ;;  %s2932_s13 = scalar_lea.sflag [#allocation3], %s390_s21 }
 0x292   : > { %1505 = vst [vmem:[%s2914_s1] sm:$0xff] %v1504_v59  ;;  %s2928_s8 = scalar_lea.hbm %s3029_s6, %s1757_s15  ;;  %s1955_s28 = scalar_lea.vmem %s2922_s11, 2048 }
 0x293   : > { %p1956_p1 = scmp.ne.s32.totalorder %s2922_s11, %s1955_s28  ;;  %s2116_s5 = smov [#allocation2]  }
 0x294   : > { %s1959_s16 = sshll.u32 %s2116_s5, 4  ;;  %s1960_s16 = int_to_ptr.vmem [resolvable:$false] %s1959_s16 }
 0x295   : > { %p1957_p4 = pnand %p1956_p1, %p2232_p3  ;;  %s1961_s22 = scalar_lea.vmem %s1960_s16, 4096 }
 0x296   : > { %p1962_p5 = scmp.lt.s32.totalorder %s2922_s11, %s1960_s16  ;;  %p1963_p6 = scmp.lt.s32.totalorder %s1961_s22, %s1955_s28 }
 0x297   : > { %p1958_p2 = pneg %p1957_p4 }
 0x298   : > { %p1964_p8 = por %p1963_p6, %p1962_p5 }
 0x29a   : > { %p1965_p9 = pnand %p1964_p8, %p1958_p2 }
 0x29c   : > { %1968 = shalt.err (!%p1965_p9)
}
 0x29d   : > { %s1969_s21 = scalar_lea.hbm %s2928_s8, 2048  ;;  %s1973_s30 = scalar_lea.hbm %s3029_s6, 8192 }
 0x29e   : > { %p1970_p10 = scmp.ne.s32.totalorder %s2928_s8, %s1969_s21  ;;  %p1974_p1 = scmp.lt.u32.totalorder %s2928_s8, %s3029_s6 }
 0x29f   : > { %p1975_p4 = scmp.lt.u32.totalorder %s1973_s30, %s1969_s21  ;;  %p1977_p5 = scmp.lt.u32.totalorder %s1969_s21, %s2928_s8 }
 0x2a0   : > { %p1971_p11 = pnand %p1970_p10, %p2232_p3 }
 0x2a1   : > { %p1976_p2 = por %p1975_p4, %p1974_p1 }
 0x2a2   : > { %p1972_p0 = pneg %p1971_p11 }
 0x2a3   : > { %p1978_p6 = por %p1977_p5, %p1976_p2 }
 0x2a5   : > { %p1979_p8 = pnand %p1978_p6, %p1972_p0 }
 0x2a7   : > { %1982 = shalt.err (!%p1979_p8)
}
 0x2a8   : > { %s2117_s18 = smov 128   ;;  %s3064_s28 = smov 8  }
 0x2a9   : > { %1833 = dma.vmem_to_hbm [thread:$0]  (%p2232_p3), %s2922_s11, 2048, %s2928_s8, %s2932_s13, %s2117_s18, %s2117_s18, %s3064_s28  }
 0x2aa   : > { %s1758_s5 = sshll.u32 %s2093_s29, 7  ;;  %s1544_s16 = sshll.u32 %s2914_s1, 4  ;;  %s1545_s16 = int_to_ptr.vmem [resolvable:$true] %s1544_s16 }
 0x2ab   : > { %s2962_s21 = scalar_lea.hbm %s3030_s7, %s1758_s5  ;;  %s3065_s14 = sand.u32 1, %s2069_s25  }
 0x2ac   : > { %s1512_s30 = scalar_lea.sflag [#allocation5], %s3065_s14  ;;  %s1983_s17 = scalar_lea.vmem %s1545_s16, 128 }
 0x2ad   : > { %p1984_p9 = scmp.ne.s32.totalorder %s1545_s16, %s1983_s17  ;;  %s2118_s15 = smov [#allocation4]  }
 0x2ae   : > { %s1987_s19 = sshll.u32 %s2118_s15, 4  ;;  %s1988_s19 = int_to_ptr.vmem [resolvable:$false] %s1987_s19 }
 0x2af   : > { %p1985_p10 = pnand %p1984_p9, %p2259_p12  ;;  %s1989_s0 = scalar_lea.vmem %s1988_s19, 256 }
 0x2b0   : > { %p1990_p3 = scmp.lt.s32.totalorder %s1545_s16, %s1988_s19  ;;  %p1991_p0 = scmp.lt.s32.totalorder %s1989_s0, %s1983_s17 }
 0x2b1   : > { %p1986_p11 = pneg %p1985_p10 }
 0x2b2   : > { %p1992_p1 = por %p1991_p0, %p1990_p3 }
 0x2b4   : > { %p1993_p4 = pnand %p1992_p1, %p1986_p11 }
 0x2b6   : > { %1996 = shalt.err (!%p1993_p4)
}
 0x2b7   : > { %s1997_s29 = scalar_lea.hbm %s2962_s21, 128  ;;  %s2001_s8 = scalar_lea.hbm %s3030_s7, 256 }
 0x2b8   : > { %p1998_p2 = scmp.ne.s32.totalorder %s2962_s21, %s1997_s29  ;;  %p2002_p8 = scmp.lt.u32.totalorder %s2962_s21, %s3030_s7 }
 0x2b9   : > { %p2003_p9 = scmp.lt.u32.totalorder %s2001_s8, %s1997_s29  ;;  %p2005_p11 = scmp.lt.u32.totalorder %s1997_s29, %s2962_s21 }
 0x2ba   : > { %p1999_p5 = pnand %p1998_p2, %p2259_p12 }
 0x2bb   : > { %p2004_p10 = por %p2003_p9, %p2002_p8 }
 0x2bc   : > { %p2000_p6 = pneg %p1999_p5 }
 0x2bd   : > { %p2006_p3 = por %p2005_p11, %p2004_p10 }
 0x2bf   : > { %p2007_p0 = pnand %p2006_p3, %p2000_p6 }
 0x2c1   : > { %2010 = shalt.err (!%p2007_p0)
}
 0x2c2   : > { %1834 = dma.vmem_to_hbm [thread:$0]  (%p2259_p12), %s1545_s16, 128, %s2962_s21, %s1512_s30  }
 0x2c3 PF: > { %p1844_p1 = scmp.ge.s32.totalorder %s2105_s9, 2  ;;  %s1556_s0 = sand.u32 1, %s2077_s4  }
 0x2c4   : > { %s1557_s28 = scalar_lea.sflag [#allocation3], %s1556_s0 }
 0x2c5   : > { %p1838_p4 = pnand %p1844_p1, %p2247_p7 }
 0x2c7   : > { %2056 = dma.done.wait (!%p1838_p4), %s1557_s28, 2048  }
 0x2c8   : > { %2058 = vsyncadd (!%p1838_p4), %s1557_s28, 4294965248  ;;  %s1565_s5 = sand.u32 1, %s2065_s24   ;;  %p1841_p2 = pnand %p1844_p1, %p2271_p13 }
 0x2c9   : > { %s1566_s22 = scalar_lea.sflag [#allocation5], %s1565_s5 }
 0x2ca   : > { %2060 = dma.done.wait (!%p1841_p2), %s1566_s22, 128  }
 0x2cb   : > { %2062 = vsyncadd (!%p1841_p2), %s1566_s22, 4294967168  ;;  %s24_s9 = sadd.s32 1, %s2105_s9   ;;  %s3066_s23 = sld [smem:[#allocation13_spill]] }
 0x2cc   : > { %p21_p12 = scmp.ge.s32.totalorder %s24_s9, 6   ;;  %s3067_s20 = sld [smem:[#allocation8_spill]] }
 0x2cd   : > { %s3068_s5 = sld [smem:[#allocation14_spill]]  ;;  %s3069_s28 = sld [smem:[#allocation9_spill]] }
 0x2ce   : > { %s3070_s29 = sld [smem:[#allocation10_spill]]  ;;  %s3071_s30 = sld [smem:[#allocation11_spill]] }
 0x2cf   : > { %s3072_s8 = sld [smem:[#allocation12_spill]]  ;;  %s3073_s24 = smov %s2069_s25 }
 0x2d0   : > { %s3074_s25 = smov %s2073_s26  ;;  %s3076_s4 = smov %s2081_s27 }
 0x2d1   : > { %s3075_s26 = smov %s3066_s23  ;;  %23 = sbr.rel (!%p21_p12) target bundleno = 12 (0xc), region = 106 }
 0x2d2   : > { %s3077_s27 = smov %s3067_s20 }
 0x2d8   :  { %1571 = vsyncpa [#allocation3], 1 }
 0x2d9   :  { %1573 = vsyncpa [#allocation3 + $0x1], 1 }
 0x2da   :  { %1574 = vsyncpa [#allocation5], 1 }
 0x2db   :  { %1576 = vsyncpa [#allocation5 + $0x1], 1 }

</bundles_post_ra>
